<compile_context>
chip_gen: v7x
topology: tpu7x:2x2x1
jax: 0.10.0
libtpu: 0.0.40
codegen_flags: <defaults>
</compile_context>

<pallas_src>
import math

import jax
import jax.numpy as jnp
from jax.experimental import pallas as pl
from jax.experimental.pallas import tpu as pltpu

_NEG_INF = -1e18  # matches the reference masked_fill value


# ----------------------------------------------------------------------------
# Kernel
# ----------------------------------------------------------------------------
def _hier_attn_kernel(tok_ref, q_ref, bias_ref,
                      wq_ref, bq_ref, wk_ref, bk_ref, wf_ref, bf_ref,
                      out_ref, attn_ref):
    """One (batch-block, query-tile) grid step.

    tok_ref : (bb, Lt, D)  f32        q_ref   : (bb, tq, D) f32
    bias_ref: (bb, tq, Lt) bf16 additive mask (-1e18 on masked / padded keys)
    wq/wk/wf: (D, D) bf16 [in, out]   (wq/bq already folded with 1/sqrt(d))
    bq/bk/bf: (1, D) f32
    out_ref : (bb, tq, D)  f32        attn_ref: (bb, tq, Lt) f32
    """
    bb, tq, d = q_ref.shape
    lt = tok_ref.shape[1]
    f32, bf16 = jnp.float32, jnp.bfloat16

    # Hoisted casts: each operand is cast to bf16 exactly once.  Reshapes that
    # fold/split the batch dim happen on 8-aligned row boundaries (lt % 128 == 0,
    # tq % 8 == 0, d % 128 == 0) so they are free re-tilings.
    tok3_bf = tok_ref[...].astype(bf16)                       # (bb, lt, d)
    tok2_bf = tok3_bf.reshape(bb * lt, d)
    q2_bf = q_ref[...].reshape(bb * tq, d).astype(bf16)

    # Projections with the batch folded into M: one big (rows, D) x (D, D)
    # MXU matmul each, f32 accumulation.
    qp = jnp.dot(q2_bf, wq_ref[...], preferred_element_type=f32) + bq_ref[...]
    kp = jnp.dot(tok2_bf, wk_ref[...], preferred_element_type=f32) + bk_ref[...]
    qp3_bf = qp.reshape(bb, tq, d).astype(bf16)
    kp3_bf = kp.reshape(bb, lt, d).astype(bf16)

    # Batched NT scores (contract the minor dim, no transpose relayout) plus the
    # additive mask bias: a single add instead of compare+select.
    s = jnp.einsum("bqd,bkd->bqk", qp3_bf, kp3_bf, preferred_element_type=f32)
    s = s + bias_ref[...].astype(f32)

    # Softmax in f32 with an exact divide (attn is a user-visible output that
    # should match PyTorch softmax; no approximate reciprocal here).
    m = jnp.max(s, axis=-1, keepdims=True)
    e = jnp.exp(s - m)
    attn = e / jnp.sum(e, axis=-1, keepdims=True)
    attn_ref[...] = attn.astype(attn_ref.dtype)

    # masked_attention() returns token_attn unchanged -> context uses the raw
    # token_vec (no value projection in the hierarchical path).
    ctx = jnp.einsum("bqk,bkd->bqd", attn.astype(bf16), tok3_bf,
                     preferred_element_type=f32)
    ctx2_bf = ctx.reshape(bb * tq, d).astype(bf16)
    out = jnp.dot(ctx2_bf, wf_ref[...], preferred_element_type=f32) + bf_ref[...]
    out_ref[...] = out.reshape(bb, tq, d).astype(out_ref.dtype)


# ----------------------------------------------------------------------------
# Tiling / VMEM helpers
# ----------------------------------------------------------------------------
def _round_up(x, m):
    return (x + m - 1) // m * m


def _vmem_limit_bytes():
    """Generation-aware VMEM limit: 0.75x physical capacity, capped at 112 MiB
    (=> ~48 MiB on v7x's 64 MiB VMEM, 96 MiB on v5e/v6e's 128 MiB)."""
    cap = 128 * 1024 * 1024
    try:
        info = pltpu.get_tpu_info()
        for name in ("vmem_capacity_bytes", "vmem_size_bytes", "vmem_bytes"):
            v = getattr(info, name, None)
            if v:
                cap = int(v)
                break
    except Exception:  # no TPU info available -> assume v5e/v6e-class VMEM
        pass
    return min((cap * 3) // 4, 112 * 1024 * 1024)


def _step_vmem_bytes(bb, tq, lt, d):
    """Conservative per-grid-step VMEM estimate (double-buffered I/O blocks +
    live intermediates)."""
    f32, b16 = 4, 2
    tok_blk = bb * lt * d * f32
    q_blk = bb * tq * d * f32
    bias_blk = bb * tq * lt * b16
    out_blk = bb * tq * d * f32
    attn_blk = bb * tq * lt * f32
    weights = 3 * d * d * b16 + 3 * d * f32
    pipelined = 2 * (tok_blk + q_blk + bias_blk + out_blk + attn_blk + weights)
    live = (bb * tq * d * (f32 + b16)            # qp (f32) + bf16 copy
            + bb * lt * d * (f32 + 2 * b16)      # kp + kp_bf16 + tok_bf16
            + bb * tq * lt * (2 * f32 + b16)     # scores, exp, attn_bf16
            + bb * tq * d * (f32 + b16))         # ctx + ctx_bf16
    return pipelined + live


def _choose_tiling(B, Lq_pad, Lt_pad, D_pad, vmem_budget):
    """Pick (block_b, block_q): prefer the full Lq tile (avoids recomputing the
    key projection per q-tile) and the largest batch block that fits the VMEM
    budget; keep the grid >= 2 steps when B >= 2 so both v7x TCs get work."""
    bb_cap = B // 2 if B >= 2 else 1
    bb_cands = [v for v in range(min(B, bb_cap), 0, -1) if B % v == 0]
    # bf16 bias block needs its second-to-last dim to be a multiple of 16
    # (or the full extent).
    tq_cands = [t for t in range(Lq_pad, 0, -8)
                if Lq_pad % t == 0 and (t % 16 == 0 or t == Lq_pad)]
    for tq in tq_cands:
        for bb in bb_cands:
            if _step_vmem_bytes(bb, tq, Lt_pad, D_pad) <= vmem_budget:
                return bb, tq
    return 1, tq_cands[-1]


# ----------------------------------------------------------------------------
# Parameters (only the live ones; everything else is dead code in forward())
# ----------------------------------------------------------------------------
def init_params(key, d):
    """PyTorch-default-style init (U(-1/sqrt(d), 1/sqrt(d))) for the live params.

    Only token_attention.linear_query / linear_keys and the top-level
    final_linear affect forward()'s outputs; linear_values, the per-attention
    final_linear and the whole sent_attention branch are dead code.
    """
    bound = 1.0 / math.sqrt(d)

    def linear(k):
        kw, kb = jax.random.split(k)
        w = jax.random.uniform(kw, (d, d), jnp.float32, -bound, bound)  # [in, out]
        b = jax.random.uniform(kb, (1, d), jnp.float32, -bound, bound)
        return w, b

    keys = jax.random.split(key, 3)
    tok_wq, tok_bq = linear(keys[0])   # token_attention.linear_query
    tok_wk, tok_bk = linear(keys[1])   # token_attention.linear_keys
    fin_w, fin_b = linear(keys[2])     # Hierarchical_Attention.final_linear
    return dict(tok_wq=tok_wq, tok_bq=tok_bq, tok_wk=tok_wk, tok_bk=tok_bk,
                fin_w=fin_w, fin_b=fin_b)


# ----------------------------------------------------------------------------
# Wrapper
# ----------------------------------------------------------------------------
def hierarchical_attention(token_vec, sent_vec, query,
                           token_pad_mask, sent_pad_mask, params,
                           *, block_b=None, block_q=None):
    """Matches Hierarchical_Attention.forward: returns (output, token_attn).

    sent_vec / sent_pad_mask are accepted for API parity but are dead code
    w.r.t. the module's outputs (masked_attention() returns token_attn
    unchanged), so the sent-attention branch is not computed.
    """
    del sent_vec, sent_pad_mask  # dead w.r.t. forward()'s outputs

    B, Lt, D = token_vec.shape
    Lq = query.shape[1]

    # Lane-dense padding: last dims (D, Lt) to multiples of 128, Lq to a
    # multiple of 8.  Zero padding on D is exact (padded columns stay zero);
    # padded keys are masked via the additive bias; padded query rows are
    # sliced away.
    D_pad = _round_up(D, 128)
    Lt_pad = _round_up(Lt, 128)
    Lq_pad = _round_up(Lq, 8)
    scale = 1.0 / math.sqrt(D)  # scale uses the original model_dim

    def pad_last2(x, rows, cols):
        pr, pc = rows - x.shape[-2], cols - x.shape[-1]
        if pr == 0 and pc == 0:
            return x
        return jnp.pad(x, [(0, 0)] * (x.ndim - 2) + [(0, pr), (0, pc)])

    tok_p = pad_last2(token_vec.astype(jnp.float32), Lt_pad, D_pad)
    q_p = pad_last2(query.astype(jnp.float32), Lq_pad, D_pad)

    # Additive mask bias (bf16): -1e18 on masked keys and on all padding.
    bias = jnp.where(token_pad_mask, jnp.float32(_NEG_INF), jnp.float32(0.0))
    if (Lq_pad, Lt_pad) != (Lq, Lt):
        bias = jnp.pad(bias, ((0, 0), (0, Lq_pad - Lq), (0, Lt_pad - Lt)),
                       constant_values=_NEG_INF)
    bias = bias.astype(jnp.bfloat16)

    # Weights: fold 1/sqrt(d) into Wq/bq, zero-pad to D_pad, bf16 for the MXU.
    def prep_w(w, s=1.0):
        w = pad_last2(w.astype(jnp.float32) * s, D_pad, D_pad)
        return w.astype(jnp.bfloat16)

    def prep_b(b, s=1.0):
        return pad_last2(b.astype(jnp.float32) * s, 1, D_pad)

    wq, bq = prep_w(params["tok_wq"], scale), prep_b(params["tok_bq"], scale)
    wk, bk = prep_w(params["tok_wk"]), prep_b(params["tok_bk"])
    wf, bf = prep_w(params["fin_w"]), prep_b(params["fin_b"])

    vmem_limit = _vmem_limit_bytes()
    if block_b is None or block_q is None:
        bb, tq = _choose_tiling(B, Lq_pad, Lt_pad, D_pad, int(vmem_limit * 0.9))
        block_b = block_b or bb
        block_q = block_q or tq
    assert B % block_b == 0 and Lq_pad % block_q == 0

    grid = (B // block_b, Lq_pad // block_q)

    def run(single_buffer_weights):
        if single_buffer_weights:
            def wspec(r, c):  # grid-invariant -> single buffer (saves VMEM)
                return pl.BlockSpec((r, c), lambda b, q: (0, 0),
                                    pipeline_mode=pl.Buffered(1))
        else:
            def wspec(r, c):
                return pl.BlockSpec((r, c), lambda b, q: (0, 0))

        in_specs = [
            pl.BlockSpec((block_b, Lt_pad, D_pad), lambda b, q: (b, 0, 0)),   # token_vec
            pl.BlockSpec((block_b, block_q, D_pad), lambda b, q: (b, q, 0)),  # query
            pl.BlockSpec((block_b, block_q, Lt_pad), lambda b, q: (b, q, 0)), # mask bias
            wspec(D_pad, D_pad), wspec(1, D_pad),                             # Wq, bq
            wspec(D_pad, D_pad), wspec(1, D_pad),                             # Wk, bk
            wspec(D_pad, D_pad), wspec(1, D_pad),                             # Wf, bf
        ]
        out_specs = [
            pl.BlockSpec((block_b, block_q, D_pad), lambda b, q: (b, q, 0)),
            pl.BlockSpec((block_b, block_q, Lt_pad), lambda b, q: (b, q, 0)),
        ]
        return pl.pallas_call(
            _hier_attn_kernel,
            grid=grid,
            in_specs=in_specs,
            out_specs=out_specs,
            out_shape=[jax.ShapeDtypeStruct((B, Lq_pad, D_pad), jnp.float32),
                       jax.ShapeDtypeStruct((B, Lq_pad, Lt_pad), jnp.float32)],
            compiler_params=pltpu.CompilerParams(
                dimension_semantics=("parallel", "parallel"),
                vmem_limit_bytes=vmem_limit),
        )(tok_p, q_p, bias, wq, bq, wk, bk, wf, bf)

    try:
        out_p, attn_p = run(single_buffer_weights=True)
    except Exception:
        # pipeline_mode=Buffered(1) not supported by this JAX/Mosaic build ->
        # fall back to default double-buffered weight specs.
        out_p, attn_p = run(single_buffer_weights=False)

    out = out_p[:, :Lq, :D]
    attn = attn_p[:, :Lq, :Lt]
    return out, attn


# ----------------------------------------------------------------------------
# Pure-JAX f32 reference (PyTorch-faithful math) for the correctness check
# ----------------------------------------------------------------------------
def _reference(token_vec, query, token_pad_mask, params):
    d = query.shape[-1]
    qp = (query @ params["tok_wq"] + params["tok_bq"]) / math.sqrt(d)
    kp = token_vec @ params["tok_wk"] + params["tok_bk"]
    s = jnp.einsum("bqd,btd->bqt", qp, kp)
    s = jnp.where(token_pad_mask, jnp.float32(_NEG_INF), s)
    attn = jax.nn.softmax(s, axis=-1)
    ctx = jnp.einsum("bqt,btd->bqd", attn, token_vec)
    out = ctx @ params["fin_w"] + params["fin_b"]
    return out, attn


if __name__ == "__main__":
    key = jax.random.PRNGKey(0)
    B, Lq, Lt, Ls, D = 2, 8, 16, 8, 32  # Lt divisible by Ls (as the ref's view() requires)
    ks = jax.random.split(key, 6)

    token_vec = jax.random.normal(ks[0], (B, Lt, D), jnp.float32)
    sent_vec = jax.random.normal(ks[1], (B, Ls, D), jnp.float32)
    query = jax.random.normal(ks[2], (B, Lq, D), jnp.float32)
    token_pad_mask = jax.random.uniform(ks[3], (B, Lq, Lt)) < 0.2
    sent_pad_mask = jax.random.uniform(ks[4], (B, Lq, Ls)) < 0.2
    params = init_params(ks[5], D)

    out, attn = hierarchical_attention(token_vec, sent_vec, query,
                                       token_pad_mask, sent_pad_mask, params)
    jax.block_until_ready((out, attn))

    ref_out, ref_attn = _reference(token_vec, query, token_pad_mask, params)
    assert out.shape == (B, Lq, D) and attn.shape == (B, Lq, Lt)
    # bf16 MXU operands vs the pure-f32 reference -> modest tolerances.
    assert jnp.allclose(attn, ref_attn, atol=2e-2, rtol=2e-2), (
        "attn mismatch, max abs err = %f" % float(jnp.max(jnp.abs(attn - ref_attn))))
    assert jnp.allclose(out, ref_out, atol=5e-2, rtol=2e-2), (
        "out mismatch, max abs err = %f" % float(jnp.max(jnp.abs(out - ref_out))))

    print("KERNEL_OK")
</pallas_src>

<mosaic_0001>
module attributes {stable_mosaic.version = 11 : i64} {
  func.func @_hier_attn_kernel(%arg0: i32, %arg1: i32, %arg2: memref<1x128x128xf32, #tpu.memory_space<vmem>>, %arg3: memref<1x8x128xf32, #tpu.memory_space<vmem>>, %arg4: memref<1x8x128xbf16, #tpu.memory_space<vmem>>, %arg5: memref<128x128xbf16, #tpu.memory_space<vmem>>, %arg6: memref<1x128xf32, #tpu.memory_space<vmem>>, %arg7: memref<128x128xbf16, #tpu.memory_space<vmem>>, %arg8: memref<1x128xf32, #tpu.memory_space<vmem>>, %arg9: memref<128x128xbf16, #tpu.memory_space<vmem>>, %arg10: memref<1x128xf32, #tpu.memory_space<vmem>>, %arg11: memref<1x8x128xf32, #tpu.memory_space<vmem>>, %arg12: memref<1x8x128xf32, #tpu.memory_space<vmem>>) attributes {dimension_semantics = [#tpu.dimension_semantics<parallel>, #tpu.dimension_semantics<parallel>], iteration_bounds = array<i64: 2, 1>, scalar_prefetch = 0 : i64, scratch_operands = 0 : i64, tpu.core_type = #tpu.core_type<tc>, window_params = [{transform_indices = @transform_0, window_bounds = array<i64: 1, 128, 128>}, {transform_indices = @transform_1, window_bounds = array<i64: 1, 8, 128>}, {transform_indices = @transform_2, window_bounds = array<i64: 1, 8, 128>}, {pipeline_mode = #tpu.pipeline_mode<synchronous>, transform_indices = @transform_3, window_bounds = array<i64: 128, 128>}, {pipeline_mode = #tpu.pipeline_mode<synchronous>, transform_indices = @transform_4, window_bounds = array<i64: 1, 128>}, {pipeline_mode = #tpu.pipeline_mode<synchronous>, transform_indices = @transform_5, window_bounds = array<i64: 128, 128>}, {pipeline_mode = #tpu.pipeline_mode<synchronous>, transform_indices = @transform_6, window_bounds = array<i64: 1, 128>}, {pipeline_mode = #tpu.pipeline_mode<synchronous>, transform_indices = @transform_7, window_bounds = array<i64: 128, 128>}, {pipeline_mode = #tpu.pipeline_mode<synchronous>, transform_indices = @transform_8, window_bounds = array<i64: 1, 128>}, {transform_indices = @transform_9, window_bounds = array<i64: 1, 8, 128>}, {transform_indices = @transform_10, window_bounds = array<i64: 1, 8, 128>}]} {
    %c0 = arith.constant 0 : index
    %c0_0 = arith.constant 0 : index
    %c0_1 = arith.constant 0 : index
    %0 = vector.load %arg2[%c0, %c0_0, %c0_1] : memref<1x128x128xf32, #tpu.memory_space<vmem>>, vector<1x128x128xf32>
    %1 = arith.truncf %0 : vector<1x128x128xf32> to vector<1x128x128xbf16>
    %2 = vector.shape_cast %1 : vector<1x128x128xbf16> to vector<128x128xbf16>
    %c0_2 = arith.constant 0 : index
    %c0_3 = arith.constant 0 : index
    %c0_4 = arith.constant 0 : index
    %3 = vector.load %arg3[%c0_2, %c0_3, %c0_4] : memref<1x8x128xf32, #tpu.memory_space<vmem>>, vector<1x8x128xf32>
    %4 = vector.shape_cast %3 : vector<1x8x128xf32> to vector<8x128xf32>
    %5 = arith.truncf %4 : vector<8x128xf32> to vector<8x128xbf16>
    %c0_5 = arith.constant 0 : index
    %c0_6 = arith.constant 0 : index
    %6 = vector.load %arg5[%c0_5, %c0_6] : memref<128x128xbf16, #tpu.memory_space<vmem>>, vector<128x128xbf16>
    %cst = arith.constant dense<0.000000e+00> : vector<8x128xf32>
    %7 = tpu.matmul %5, %6, %cst {dimension_numbers = #tpu.dot_dimension_numbers<[1], [0], [0], [1], [0, 0, 1, 1], [], []>} : vector<8x128xbf16>, vector<128x128xbf16>, vector<8x128xf32> -> vector<8x128xf32>
    %c0_7 = arith.constant 0 : index
    %c0_8 = arith.constant 0 : index
    %8 = vector.load %arg6[%c0_7, %c0_8] : memref<1x128xf32, #tpu.memory_space<vmem>>, vector<1x128xf32>
    %9 = vector.broadcast %8 : vector<1x128xf32> to vector<8x128xf32>
    %10 = arith.addf %7, %9 : vector<8x128xf32>
    %c0_9 = arith.constant 0 : index
    %c0_10 = arith.constant 0 : index
    %11 = vector.load %arg7[%c0_9, %c0_10] : memref<128x128xbf16, #tpu.memory_space<vmem>>, vector<128x128xbf16>
    %cst_11 = arith.constant dense<0.000000e+00> : vector<128x128xf32>
    %12 = tpu.matmul %2, %11, %cst_11 {dimension_numbers = #tpu.dot_dimension_numbers<[1], [0], [0], [1], [0, 0, 1, 1], [], []>} : vector<128x128xbf16>, vector<128x128xbf16>, vector<128x128xf32> -> vector<128x128xf32>
    %c0_12 = arith.constant 0 : index
    %c0_13 = arith.constant 0 : index
    %13 = vector.load %arg8[%c0_12, %c0_13] : memref<1x128xf32, #tpu.memory_space<vmem>>, vector<1x128xf32>
    %14 = vector.broadcast %13 : vector<1x128xf32> to vector<128x128xf32>
    %15 = arith.addf %12, %14 : vector<128x128xf32>
    %16 = vector.shape_cast %10 : vector<8x128xf32> to vector<1x8x128xf32>
    %17 = arith.truncf %16 : vector<1x8x128xf32> to vector<1x8x128xbf16>
    %18 = vector.shape_cast %15 : vector<128x128xf32> to vector<1x128x128xf32>
    %19 = arith.truncf %18 : vector<1x128x128xf32> to vector<1x128x128xbf16>
    "tpu.trace_start"() <{level = 10 : i32, message = "bqd,bkd->bqk"}> : () -> ()
    %cst_14 = arith.constant dense<0.000000e+00> : vector<1x8x128xf32>
    %20 = tpu.matmul %17, %19, %cst_14 {dimension_numbers = #tpu.dot_dimension_numbers<[2], [2], [1], [1], [0, 0, 0, 1, 1, 1], [0], [0]>} : vector<1x8x128xbf16>, vector<1x128x128xbf16>, vector<1x8x128xf32> -> vector<1x8x128xf32>
    "tpu.trace_stop"() : () -> ()
    %c0_15 = arith.constant 0 : index
    %c0_16 = arith.constant 0 : index
    %c0_17 = arith.constant 0 : index
    %21 = vector.load %arg4[%c0_15, %c0_16, %c0_17] : memref<1x8x128xbf16, #tpu.memory_space<vmem>>, vector<1x8x128xbf16>
    %22 = arith.extf %21 : vector<1x8x128xbf16> to vector<1x8x128xf32>
    %23 = arith.addf %20, %22 : vector<1x8x128xf32>
    %cst_18 = arith.constant dense<0xFF800000> : vector<1x8xf32>
    %24 = vector.multi_reduction <maximumf>, %23, %cst_18 [2] : vector<1x8x128xf32> to vector<1x8xf32>
    %25 = vector.shape_cast %24 : vector<1x8xf32> to vector<1x8x1xf32>
    %26 = vector.broadcast %25 : vector<1x8x1xf32> to vector<1x8x128xf32>
    %27 = arith.subf %23, %26 : vector<1x8x128xf32>
    %28 = math.exp %27 : vector<1x8x128xf32>
    %cst_19 = arith.constant dense<0.000000e+00> : vector<1x8xf32>
    %29 = vector.multi_reduction <add>, %28, %cst_19 [2] : vector<1x8x128xf32> to vector<1x8xf32>
    %30 = vector.shape_cast %29 : vector<1x8xf32> to vector<1x8x1xf32>
    %31 = vector.broadcast %30 : vector<1x8x1xf32> to vector<1x8x128xf32>
    %32 = arith.divf %28, %31 : vector<1x8x128xf32>
    %c0_20 = arith.constant 0 : index
    %c0_21 = arith.constant 0 : index
    %c0_22 = arith.constant 0 : index
    %33 = vector.load %arg12[%c0_20, %c0_21, %c0_22] : memref<1x8x128xf32, #tpu.memory_space<vmem>>, vector<1x8x128xf32>
    tpu.vector_store %arg12[%c0_20, %c0_21, %c0_22], %32 {strides = array<i32>} : memref<1x8x128xf32, #tpu.memory_space<vmem>>, vector<1x8x128xf32>,
    %34 = arith.truncf %32 : vector<1x8x128xf32> to vector<1x8x128xbf16>
    "tpu.trace_start"() <{level = 10 : i32, message = "bqk,bkd->bqd"}> : () -> ()
    %cst_23 = arith.constant dense<0.000000e+00> : vector<1x8x128xf32>
    %35 = tpu.matmul %34, %1, %cst_23 {dimension_numbers = #tpu.dot_dimension_numbers<[2], [1], [1], [2], [0, 0, 0, 1, 1, 2], [0], [0]>} : vector<1x8x128xbf16>, vector<1x128x128xbf16>, vector<1x8x128xf32> -> vector<1x8x128xf32>
    "tpu.trace_stop"() : () -> ()
    %36 = vector.shape_cast %35 : vector<1x8x128xf32> to vector<8x128xf32>
    %37 = arith.truncf %36 : vector<8x128xf32> to vector<8x128xbf16>
    %c0_24 = arith.constant 0 : index
    %c0_25 = arith.constant 0 : index
    %38 = vector.load %arg9[%c0_24, %c0_25] : memref<128x128xbf16, #tpu.memory_space<vmem>>, vector<128x128xbf16>
    %cst_26 = arith.constant dense<0.000000e+00> : vector<8x128xf32>
    %39 = tpu.matmul %37, %38, %cst_26 {dimension_numbers = #tpu.dot_dimension_numbers<[1], [0], [0], [1], [0, 0, 1, 1], [], []>} : vector<8x128xbf16>, vector<128x128xbf16>, vector<8x128xf32> -> vector<8x128xf32>
    %c0_27 = arith.constant 0 : index
    %c0_28 = arith.constant 0 : index
    %40 = vector.load %arg10[%c0_27, %c0_28] : memref<1x128xf32, #tpu.memory_space<vmem>>, vector<1x128xf32>
    %41 = vector.broadcast %40 : vector<1x128xf32> to vector<8x128xf32>
    %42 = arith.addf %39, %41 : vector<8x128xf32>
    %43 = vector.shape_cast %42 : vector<8x128xf32> to vector<1x8x128xf32>
    %c0_29 = arith.constant 0 : index
    %c0_30 = arith.constant 0 : index
    %c0_31 = arith.constant 0 : index
    %44 = vector.load %arg11[%c0_29, %c0_30, %c0_31] : memref<1x8x128xf32, #tpu.memory_space<vmem>>, vector<1x8x128xf32>
    tpu.vector_store %arg11[%c0_29, %c0_30, %c0_31], %43 {strides = array<i32>} : memref<1x8x128xf32, #tpu.memory_space<vmem>>, vector<1x8x128xf32>,
    return
  }
  func.func @transform_0(%arg0: i32, %arg1: i32) -> (i32, i32, i32) {
    %c0_i32 = arith.constant 0 : i32
    %c0_i32_0 = arith.constant 0 : i32
    %c0_i32_1 = arith.constant 0 : i32
    return %arg0, %c0_i32, %c0_i32_0 : i32, i32, i32
  }
  func.func @transform_1(%arg0: i32, %arg1: i32) -> (i32, i32, i32) {
    %c0_i32 = arith.constant 0 : i32
    %c0_i32_0 = arith.constant 0 : i32
    return %arg0, %arg1, %c0_i32 : i32, i32, i32
  }
  func.func @transform_2(%arg0: i32, %arg1: i32) -> (i32, i32, i32) {
    %c0_i32 = arith.constant 0 : i32
    %c0_i32_0 = arith.constant 0 : i32
    return %arg0, %arg1, %c0_i32 : i32, i32, i32
  }
  func.func @transform_3(%arg0: i32, %arg1: i32) -> (i32, i32) {
    %c0_i32 = arith.constant 0 : i32
    %c0_i32_0 = arith.constant 0 : i32
    %c0_i32_1 = arith.constant 0 : i32
    return %c0_i32, %c0_i32_0 : i32, i32
  }
  func.func @transform_4(%arg0: i32, %arg1: i32) -> (i32, i32) {
    %c0_i32 = arith.constant 0 : i32
    %c0_i32_0 = arith.constant 0 : i32
    %c0_i32_1 = arith.constant 0 : i32
    return %c0_i32, %c0_i32_0 : i32, i32
  }
  func.func @transform_5(%arg0: i32, %arg1: i32) -> (i32, i32) {
    %c0_i32 = arith.constant 0 : i32
    %c0_i32_0 = arith.constant 0 : i32
    %c0_i32_1 = arith.constant 0 : i32
    return %c0_i32, %c0_i32_0 : i32, i32
  }
  func.func @transform_6(%arg0: i32, %arg1: i32) -> (i32, i32) {
    %c0_i32 = arith.constant 0 : i32
    %c0_i32_0 = arith.constant 0 : i32
    %c0_i32_1 = arith.constant 0 : i32
    return %c0_i32, %c0_i32_0 : i32, i32
  }
  func.func @transform_7(%arg0: i32, %arg1: i32) -> (i32, i32) {
    %c0_i32 = arith.constant 0 : i32
    %c0_i32_0 = arith.constant 0 : i32
    %c0_i32_1 = arith.constant 0 : i32
    return %c0_i32, %c0_i32_0 : i32, i32
  }
  func.func @transform_8(%arg0: i32, %arg1: i32) -> (i32, i32) {
    %c0_i32 = arith.constant 0 : i32
    %c0_i32_0 = arith.constant 0 : i32
    %c0_i32_1 = arith.constant 0 : i32
    return %c0_i32, %c0_i32_0 : i32, i32
  }
  func.func @transform_9(%arg0: i32, %arg1: i32) -> (i32, i32, i32) {
    %c0_i32 = arith.constant 0 : i32
    %c0_i32_0 = arith.constant 0 : i32
    return %arg0, %arg1, %c0_i32 : i32, i32, i32
  }
  func.func @transform_10(%arg0: i32, %arg1: i32) -> (i32, i32, i32) {
    %c0_i32 = arith.constant 0 : i32
    %c0_i32_0 = arith.constant 0 : i32
    return %arg0, %arg1, %c0_i32 : i32, i32, i32
  }
}

module attributes {stable_mosaic.version = 11 : i64} {
  func.func @_hier_attn_kernel(%arg0: i32, %arg1: i32, %arg2: memref<1x128x128xf32, #tpu.memory_space<vmem>>, %arg3: memref<1x8x128xf32, #tpu.memory_space<vmem>>, %arg4: memref<1x8x128xbf16, #tpu.memory_space<vmem>>, %arg5: memref<128x128xbf16, #tpu.memory_space<vmem>>, %arg6: memref<1x128xf32, #tpu.memory_space<vmem>>, %arg7: memref<128x128xbf16, #tpu.memory_space<vmem>>, %arg8: memref<1x128xf32, #tpu.memory_space<vmem>>, %arg9: memref<128x128xbf16, #tpu.memory_space<vmem>>, %arg10: memref<1x128xf32, #tpu.memory_space<vmem>>, %arg11: memref<1x8x128xf32, #tpu.memory_space<vmem>>, %arg12: memref<1x8x128xf32, #tpu.memory_space<vmem>>) attributes {dimension_semantics = [#tpu.dimension_semantics<parallel>, #tpu.dimension_semantics<parallel>], iteration_bounds = array<i64: 2, 1>, scalar_prefetch = 0 : i64, scratch_operands = 0 : i64, tpu.core_type = #tpu.core_type<tc>, window_params = [{transform_indices = @transform_0, window_bounds = array<i64: 1, 128, 128>}, {transform_indices = @transform_1, window_bounds = array<i64: 1, 8, 128>}, {transform_indices = @transform_2, window_bounds = array<i64: 1, 8, 128>}, {pipeline_mode = #tpu.pipeline_mode<synchronous>, transform_indices = @transform_3, window_bounds = array<i64: 128, 128>}, {pipeline_mode = #tpu.pipeline_mode<synchronous>, transform_indices = @transform_4, window_bounds = array<i64: 1, 128>}, {pipeline_mode = #tpu.pipeline_mode<synchronous>, transform_indices = @transform_5, window_bounds = array<i64: 128, 128>}, {pipeline_mode = #tpu.pipeline_mode<synchronous>, transform_indices = @transform_6, window_bounds = array<i64: 1, 128>}, {pipeline_mode = #tpu.pipeline_mode<synchronous>, transform_indices = @transform_7, window_bounds = array<i64: 128, 128>}, {pipeline_mode = #tpu.pipeline_mode<synchronous>, transform_indices = @transform_8, window_bounds = array<i64: 1, 128>}, {transform_indices = @transform_9, window_bounds = array<i64: 1, 8, 128>}, {transform_indices = @transform_10, window_bounds = array<i64: 1, 8, 128>}]} {
    %c0 = arith.constant 0 : index
    %c0_0 = arith.constant 0 : index
    %c0_1 = arith.constant 0 : index
    %0 = vector.load %arg2[%c0, %c0_0, %c0_1] : memref<1x128x128xf32, #tpu.memory_space<vmem>>, vector<1x128x128xf32>
    %1 = arith.truncf %0 : vector<1x128x128xf32> to vector<1x128x128xbf16>
    %2 = vector.shape_cast %1 : vector<1x128x128xbf16> to vector<128x128xbf16>
    %c0_2 = arith.constant 0 : index
    %c0_3 = arith.constant 0 : index
    %c0_4 = arith.constant 0 : index
    %3 = vector.load %arg3[%c0_2, %c0_3, %c0_4] : memref<1x8x128xf32, #tpu.memory_space<vmem>>, vector<1x8x128xf32>
    %4 = vector.shape_cast %3 : vector<1x8x128xf32> to vector<8x128xf32>
    %5 = arith.truncf %4 : vector<8x128xf32> to vector<8x128xbf16>
    %c0_5 = arith.constant 0 : index
    %c0_6 = arith.constant 0 : index
    %6 = vector.load %arg5[%c0_5, %c0_6] : memref<128x128xbf16, #tpu.memory_space<vmem>>, vector<128x128xbf16>
    %cst = arith.constant dense<0.000000e+00> : vector<8x128xf32>
    %7 = tpu.matmul %5, %6, %cst {dimension_numbers = #tpu.dot_dimension_numbers<[1], [0], [0], [1], [0, 0, 1, 1], [], []>} : vector<8x128xbf16>, vector<128x128xbf16>, vector<8x128xf32> -> vector<8x128xf32>
    %c0_7 = arith.constant 0 : index
    %c0_8 = arith.constant 0 : index
    %8 = vector.load %arg6[%c0_7, %c0_8] : memref<1x128xf32, #tpu.memory_space<vmem>>, vector<1x128xf32>
    %9 = vector.broadcast %8 : vector<1x128xf32> to vector<8x128xf32>
    %10 = arith.addf %7, %9 : vector<8x128xf32>
    %c0_9 = arith.constant 0 : index
    %c0_10 = arith.constant 0 : index
    %11 = vector.load %arg7[%c0_9, %c0_10] : memref<128x128xbf16, #tpu.memory_space<vmem>>, vector<128x128xbf16>
    %cst_11 = arith.constant dense<0.000000e+00> : vector<128x128xf32>
    %12 = tpu.matmul %2, %11, %cst_11 {dimension_numbers = #tpu.dot_dimension_numbers<[1], [0], [0], [1], [0, 0, 1, 1], [], []>} : vector<128x128xbf16>, vector<128x128xbf16>, vector<128x128xf32> -> vector<128x128xf32>
    %c0_12 = arith.constant 0 : index
    %c0_13 = arith.constant 0 : index
    %13 = vector.load %arg8[%c0_12, %c0_13] : memref<1x128xf32, #tpu.memory_space<vmem>>, vector<1x128xf32>
    %14 = vector.broadcast %13 : vector<1x128xf32> to vector<128x128xf32>
    %15 = arith.addf %12, %14 : vector<128x128xf32>
    %16 = vector.shape_cast %10 : vector<8x128xf32> to vector<1x8x128xf32>
    %17 = arith.truncf %16 : vector<1x8x128xf32> to vector<1x8x128xbf16>
    %18 = vector.shape_cast %15 : vector<128x128xf32> to vector<1x128x128xf32>
    %19 = arith.truncf %18 : vector<1x128x128xf32> to vector<1x128x128xbf16>
    "tpu.trace_start"() <{level = 10 : i32, message = "bqd,bkd->bqk"}> : () -> ()
    %cst_14 = arith.constant dense<0.000000e+00> : vector<1x8x128xf32>
    %20 = tpu.matmul %17, %19, %cst_14 {dimension_numbers = #tpu.dot_dimension_numbers<[2], [2], [1], [1], [0, 0, 0, 1, 1, 1], [0], [0]>} : vector<1x8x128xbf16>, vector<1x128x128xbf16>, vector<1x8x128xf32> -> vector<1x8x128xf32>
    "tpu.trace_stop"() : () -> ()
    %c0_15 = arith.constant 0 : index
    %c0_16 = arith.constant 0 : index
    %c0_17 = arith.constant 0 : index
    %21 = vector.load %arg4[%c0_15, %c0_16, %c0_17] : memref<1x8x128xbf16, #tpu.memory_space<vmem>>, vector<1x8x128xbf16>
    %22 = arith.extf %21 : vector<1x8x128xbf16> to vector<1x8x128xf32>
    %23 = arith.addf %20, %22 : vector<1x8x128xf32>
    %cst_18 = arith.constant dense<0xFF800000> : vector<1x8xf32>
    %24 = vector.multi_reduction <maximumf>, %23, %cst_18 [2] : vector<1x8x128xf32> to vector<1x8xf32>
    %25 = vector.shape_cast %24 : vector<1x8xf32> to vector<1x8x1xf32>
    %26 = vector.broadcast %25 : vector<1x8x1xf32> to vector<1x8x128xf32>
    %27 = arith.subf %23, %26 : vector<1x8x128xf32>
    %28 = math.exp %27 : vector<1x8x128xf32>
    %cst_19 = arith.constant dense<0.000000e+00> : vector<1x8xf32>
    %29 = vector.multi_reduction <add>, %28, %cst_19 [2] : vector<1x8x128xf32> to vector<1x8xf32>
    %30 = vector.shape_cast %29 : vector<1x8xf32> to vector<1x8x1xf32>
    %31 = vector.broadcast %30 : vector<1x8x1xf32> to vector<1x8x128xf32>
    %32 = arith.divf %28, %31 : vector<1x8x128xf32>
    %c0_20 = arith.constant 0 : index
    %c0_21 = arith.constant 0 : index
    %c0_22 = arith.constant 0 : index
    %33 = vector.load %arg12[%c0_20, %c0_21, %c0_22] : memref<1x8x128xf32, #tpu.memory_space<vmem>>, vector<1x8x128xf32>
    tpu.vector_store %arg12[%c0_20, %c0_21, %c0_22], %32 {strides = array<i32>} : memref<1x8x128xf32, #tpu.memory_space<vmem>>, vector<1x8x128xf32>,
    %34 = arith.truncf %32 : vector<1x8x128xf32> to vector<1x8x128xbf16>
    "tpu.trace_start"() <{level = 10 : i32, message = "bqk,bkd->bqd"}> : () -> ()
    %cst_23 = arith.constant dense<0.000000e+00> : vector<1x8x128xf32>
    %35 = tpu.matmul %34, %1, %cst_23 {dimension_numbers = #tpu.dot_dimension_numbers<[2], [1], [1], [2], [0, 0, 0, 1, 1, 2], [0], [0]>} : vector<1x8x128xbf16>, vector<1x128x128xbf16>, vector<1x8x128xf32> -> vector<1x8x128xf32>
    "tpu.trace_stop"() : () -> ()
    %36 = vector.shape_cast %35 : vector<1x8x128xf32> to vector<8x128xf32>
    %37 = arith.truncf %36 : vector<8x128xf32> to vector<8x128xbf16>
    %c0_24 = arith.constant 0 : index
    %c0_25 = arith.constant 0 : index
    %38 = vector.load %arg9[%c0_24, %c0_25] : memref<128x128xbf16, #tpu.memory_space<vmem>>, vector<128x128xbf16>
    %cst_26 = arith.constant dense<0.000000e+00> : vector<8x128xf32>
    %39 = tpu.matmul %37, %38, %cst_26 {dimension_numbers = #tpu.dot_dimension_numbers<[1], [0], [0], [1], [0, 0, 1, 1], [], []>} : vector<8x128xbf16>, vector<128x128xbf16>, vector<8x128xf32> -> vector<8x128xf32>
    %c0_27 = arith.constant 0 : index
    %c0_28 = arith.constant 0 : index
    %40 = vector.load %arg10[%c0_27, %c0_28] : memref<1x128xf32, #tpu.memory_space<vmem>>, vector<1x128xf32>
    %41 = vector.broadcast %40 : vector<1x128xf32> to vector<8x128xf32>
    %42 = arith.addf %39, %41 : vector<8x128xf32>
    %43 = vector.shape_cast %42 : vector<8x128xf32> to vector<1x8x128xf32>
    %c0_29 = arith.constant 0 : index
    %c0_30 = arith.constant 0 : index
    %c0_31 = arith.constant 0 : index
    %44 = vector.load %arg11[%c0_29, %c0_30, %c0_31] : memref<1x8x128xf32, #tpu.memory_space<vmem>>, vector<1x8x128xf32>
    tpu.vector_store %arg11[%c0_29, %c0_30, %c0_31], %43 {strides = array<i32>} : memref<1x8x128xf32, #tpu.memory_space<vmem>>, vector<1x8x128xf32>,
    return
  }
  func.func @transform_0(%arg0: i32, %arg1: i32) -> (i32, i32, i32) {
    %c0_i32 = arith.constant 0 : i32
    %c0_i32_0 = arith.constant 0 : i32
    %c0_i32_1 = arith.constant 0 : i32
    return %arg0, %c0_i32, %c0_i32_0 : i32, i32, i32
  }
  func.func @transform_1(%arg0: i32, %arg1: i32) -> (i32, i32, i32) {
    %c0_i32 = arith.constant 0 : i32
    %c0_i32_0 = arith.constant 0 : i32
    return %arg0, %arg1, %c0_i32 : i32, i32, i32
  }
  func.func @transform_2(%arg0: i32, %arg1: i32) -> (i32, i32, i32) {
    %c0_i32 = arith.constant 0 : i32
    %c0_i32_0 = arith.constant 0 : i32
    return %arg0, %arg1, %c0_i32 : i32, i32, i32
  }
  func.func @transform_3(%arg0: i32, %arg1: i32) -> (i32, i32) {
    %c0_i32 = arith.constant 0 : i32
    %c0_i32_0 = arith.constant 0 : i32
    %c0_i32_1 = arith.constant 0 : i32
    return %c0_i32, %c0_i32_0 : i32, i32
  }
  func.func @transform_4(%arg0: i32, %arg1: i32) -> (i32, i32) {
    %c0_i32 = arith.constant 0 : i32
    %c0_i32_0 = arith.constant 0 : i32
    %c0_i32_1 = arith.constant 0 : i32
    return %c0_i32, %c0_i32_0 : i32, i32
  }
  func.func @transform_5(%arg0: i32, %arg1: i32) -> (i32, i32) {
    %c0_i32 = arith.constant 0 : i32
    %c0_i32_0 = arith.constant 0 : i32
    %c0_i32_1 = arith.constant 0 : i32
    return %c0_i32, %c0_i32_0 : i32, i32
  }
  func.func @transform_6(%arg0: i32, %arg1: i32) -> (i32, i32) {
    %c0_i32 = arith.constant 0 : i32
    %c0_i32_0 = arith.constant 0 : i32
    %c0_i32_1 = arith.constant 0 : i32
    return %c0_i32, %c0_i32_0 : i32, i32
  }
  func.func @transform_7(%arg0: i32, %arg1: i32) -> (i32, i32) {
    %c0_i32 = arith.constant 0 : i32
    %c0_i32_0 = arith.constant 0 : i32
    %c0_i32_1 = arith.constant 0 : i32
    return %c0_i32, %c0_i32_0 : i32, i32
  }
  func.func @transform_8(%arg0: i32, %arg1: i32) -> (i32, i32) {
    %c0_i32 = arith.constant 0 : i32
    %c0_i32_0 = arith.constant 0 : i32
    %c0_i32_1 = arith.constant 0 : i32
    return %c0_i32, %c0_i32_0 : i32, i32
  }
  func.func @transform_9(%arg0: i32, %arg1: i32) -> (i32, i32, i32) {
    %c0_i32 = arith.constant 0 : i32
    %c0_i32_0 = arith.constant 0 : i32
    return %arg0, %arg1, %c0_i32 : i32, i32, i32
  }
  func.func @transform_10(%arg0: i32, %arg1: i32) -> (i32, i32, i32) {
    %c0_i32 = arith.constant 0 : i32
    %c0_i32_0 = arith.constant 0 : i32
    return %arg0, %arg1, %c0_i32 : i32, i32, i32
  }
}

</mosaic_0001>

<bundles_post_ra>
// kernel: tpu_custom_call.1
= control target key start
LH: loop header
LB: loop body
LE: loop exit
PB: predicated region body
PF: predicated region fallthrough
CT: control target
= control target key end

     0   :  { %s2708_s0 = inlined_call_operand.hbm [shape: f32[2,128,128], index: 0, kind: input, shape index: {}]   ;;  %s2709_s1 = inlined_call_operand.hbm [shape: f32[2,8,128], index: 1, kind: input, shape index: {}]   ;;  %s2710_s2 = inlined_call_operand.hbm [shape: bf16[2,8,128], index: 2, kind: input, shape index: {}]   ;;  %s2711_s3 = inlined_call_operand.hbm [shape: bf16[128,128], index: 3, kind: input, shape index: {}]   ;;  %s2712_s4 = inlined_call_operand.hbm [shape: f32[1,128], index: 4, kind: input, shape index: {}]   ;;  %s2713_s5 = inlined_call_operand.hbm [shape: bf16[128,128], index: 5, kind: input, shape index: {}]   ;;  %s2714_s6 = inlined_call_operand.hbm [shape: f32[1,128], index: 6, kind: input, shape index: {}]   ;;  %s2715_s7 = inlined_call_operand.hbm [shape: bf16[128,128], index: 7, kind: input, shape index: {}]   ;;  %s2716_s8 = inlined_call_operand.hbm [shape: f32[1,128], index: 8, kind: input, shape index: {}]   ;;  %s2717_s9 = inlined_call_operand.hbm [shape: f32[2,8,128], index: 9, kind: output, shape index: {0}]   ;;  %s2718_s10 = inlined_call_operand.hbm [shape: f32[2,8,128], index: 10, kind: output, shape index: {1}]  }
   0x1   :  { %2737 = sst [smem:[#allocation32_spill]] %s2709_s1 }
   0x2   :  { %2738 = sst [smem:[#allocation33_spill]] %s2711_s3 }
   0x3   :  { %2739 = sst [smem:[#allocation34_spill]] %s2713_s5 }
   0x4   :  { %2740 = sst [smem:[#allocation35_spill]] %s2715_s7 }
   0x5   :  { %2741 = sst [smem:[#allocation36_spill]] %s2717_s9 }
   0x6   :  { %2742 = sst [smem:[#allocation37_spill]] %s2718_s10 }
   0x7   :  { %16 = vsyncpa [#allocation3], 0 }
   0x8   :  { %18 = vsyncpa [#allocation3 + $0x1], 0 }
   0x9   :  { %19 = vsyncpa [#allocation6], 0 }
   0xa   :  { %21 = vsyncpa [#allocation6 + $0x1], 0 }
   0xb   :  { %22 = vsyncpa [#allocation9], 0 }
   0xc   :  { %23 = vsyncpa [#allocation12], 0 }
   0xd   :  { %24 = vsyncpa [#allocation15], 0 }
   0xe   :  { %25 = vsyncpa [#allocation4], 0 }
   0xf   :  { %27 = vsyncpa [#allocation4 + $0x1], 0 }
  0x10   :  { %28 = vsyncpa [#allocation19], 0 }
  0x11   :  { %30 = vsyncpa [#allocation19 + $0x1], 0  ;;  %s2193_s13 = smov 0   ;;  %s2195_s14 = smov 0  }
  0x12   :  { %s2197_s15 = smov 0   ;;  %s2199_s16 = smov 0  }
  0x13   :  { %s2201_s17 = smov 0   ;;  %s2203_s18 = smov 0  }
  0x14 LB: > { %2743 = sst [smem:[#allocation27_spill]] %s2107_s15  ;;  %s2224_s19 = sadd.s32 4294967295, %s2119_s18   ;;  %s2119_s18 = sphi %s2203_s18, %s36_s18   ;;  %s2115_s17 = sphi %s2201_s17, %s2787_s17   ;;  %s2111_s16 = sphi %s2199_s16, %s2786_s16   ;;  %s2107_s15 = sphi %s2197_s15, %s2782_s15   ;;  %s2103_s14 = sphi %s2195_s14, %s2785_s14   ;;  %s2099_s13 = sphi %s2193_s13, %s2784_s13  }
  0x15   : > { %2744 = sst [smem:[#allocation28_spill]] %s2111_s16  ;;  %p1334_p0 = scmp.ge.s32.totalorder %s2119_s18, 1 }
  0x16   : > { %p2723_p1 = scmp.eq.s32.totalorder %s2224_s19, 0  ;;  %p317_p2 = scmp.lt.s32.totalorder %s2119_s18, 3 }
  0x17   : > { %s2121_s21 = smov [#allocation8]   ;;  %s2122_s24 = smov [#allocation11]  }
  0x18   : > { %p2229_p3 = pnand %p1334_p0, %p317_p2  ;;  %s329_s22 = sshll.u32 %s2121_s21, 4  ;;  %s2233_s22 = int_to_ptr.vmem [resolvable:$true] %s329_s22 }
  0x19   : > { %s353_s25 = sshll.u32 %s2122_s24, 4  ;;  %s2123_s26 = smov [#allocation14]   ;;  %s2244_s25 = int_to_ptr.vmem [resolvable:$true] %s353_s25 }
  0x1a   : > { %s2745_s20 = scalar_select %p2229_p3, 1, 0 }
  0x1b   : > { %p1593_p4 = pneg %p2229_p3  ;;  %s2246_s27 = sshll.u32 %s2123_s26, 4  ;;  %s378_s27 = int_to_ptr.vmem [resolvable:$true] %s2246_s27 }
  0x1c   : > { %2746 = sst [smem:[#allocation29_spill]] %s2745_s20  ;;  %s2748_s3 = sld [smem:[#allocation33_spill]] }
  0x1d   : > { %p2240_p6 = pnand %p1593_p4, %p2723_p1 }
  0x1f   : > { %s2747_s23 = scalar_select %p2240_p6, 1, 0 }
  0x20   : > { %p2256_p8 = pneg %p2240_p6 }
  0x22   : > { %s1731_s30 = scalar_lea.hbm %s2748_s3, 1024 }
  0x23   : > { %p1732_p7 = scmp.ne.s32.totalorder %s2748_s3, %s1731_s30  ;;  %p1738_p11 = scmp.lt.u32.totalorder %s1731_s30, %s2748_s3 }
  0x24   : > { %s2749_s21 = scalar_select %p2256_p8, 1, 0 }
  0x25   : > { %p1734_p9 = pnand %p2256_p8, %p1732_p7 }
  0x27   : > { %p1735_p10 = pneg %p1734_p9 }
  0x29   : > { %p1740_p12 = pnand %p1738_p11, %p1735_p10 }
  0x2b   : > { %1743 = shalt.err (!%p1740_p12)
}
  0x2c   : > { %s1744_s28 = scalar_lea.vmem %s2233_s22, 1024  ;;  %p1752_p4 = scmp.lt.s32.totalorder %s2233_s22, %s2233_s22 }
  0x2d   : > { %p1745_p13 = scmp.ne.s32.totalorder %s2233_s22, %s1744_s28  ;;  %p1753_p5 = scmp.lt.s32.totalorder %s1744_s28, %s1744_s28 }
  0x2f   : > { %p1747_p0 = pnand %p1745_p13, %p2256_p8  ;;  %p1754_p7 = por %p1753_p5, %p1752_p4 }
  0x31   : > { %p1748_p2 = pneg %p1747_p0 }
  0x33   : > { %p1755_p9 = pnand %p1754_p7, %p1748_p2 }
  0x35   : > { %1758 = shalt.err (!%p1755_p9)
}
  0x36   : > { %s2124_s29 = smov 64   ;;  %s2125_s30 = smov 4  }
  0x37   : > { %1596 = dma.hbm_to_vmem [thread:$0]  (!%p2240_p6), %s2748_s3, 1024, %s2233_s22, [#allocation9], %s2124_s29, %s2124_s29, %s2125_s30  }
  0x38   : > { %s2750_s5 = sld [smem:[#allocation34_spill]] }
  0x3e   : > { %s1759_s28 = scalar_lea.hbm %s2750_s5, 1024 }
  0x3f   : > { %p1760_p5 = scmp.ne.s32.totalorder %s2750_s5, %s1759_s28  ;;  %p1766_p12 = scmp.lt.u32.totalorder %s1759_s28, %s2750_s5 }
  0x41   : > { %p1762_p10 = pnand %p1760_p5, %p2256_p8 }
  0x43   : > { %p1763_p11 = pneg %p1762_p10 }
  0x45   : > { %p1768_p13 = pnand %p1766_p12, %p1763_p11 }
  0x47   : > { %1771 = shalt.err (!%p1768_p13)
}
  0x48   : > { %s1772_s22 = scalar_lea.vmem %s2244_s25, 1024  ;;  %p1780_p7 = scmp.lt.s32.totalorder %s2244_s25, %s2244_s25 }
  0x49   : > { %p1773_p0 = scmp.ne.s32.totalorder %s2244_s25, %s1772_s22  ;;  %p1781_p9 = scmp.lt.s32.totalorder %s1772_s22, %s1772_s22 }
  0x4b   : > { %p1775_p2 = pnand %p1773_p0, %p2256_p8  ;;  %p1782_p5 = por %p1781_p9, %p1780_p7 }
  0x4d   : > { %p1776_p4 = pneg %p1775_p2 }
  0x4f   : > { %p1783_p10 = pnand %p1782_p5, %p1776_p4 }
  0x51   : > { %1786 = shalt.err (!%p1783_p10)
}
  0x52   : > { %1602 = dma.hbm_to_vmem [thread:$0]  (!%p2240_p6), %s2750_s5, 1024, %s2244_s25, [#allocation12], %s2124_s29, %s2124_s29, %s2125_s30  }
  0x53   : > { %s2751_s7 = sld [smem:[#allocation35_spill]] }
  0x59   : > { %s1787_s11 = scalar_lea.hbm %s2751_s7, 1024 }
  0x5a   : > { %p1788_p11 = scmp.ne.s32.totalorder %s2751_s7, %s1787_s11  ;;  %p1794_p0 = scmp.lt.u32.totalorder %s1787_s11, %s2751_s7 }
  0x5c   : > { %p1790_p12 = pnand %p1788_p11, %p2256_p8 }
  0x5e   : > { %p1791_p13 = pneg %p1790_p12 }
  0x60   : > { %p1796_p2 = pnand %p1794_p0, %p1791_p13 }
  0x62   : > { %1799 = shalt.err (!%p1796_p2)
}
  0x63   : > { %s1800_s22 = scalar_lea.vmem %s378_s27, 1024  ;;  %p1808_p5 = scmp.lt.s32.totalorder %s378_s27, %s378_s27 }
  0x64   : > { %p1801_p4 = scmp.ne.s32.totalorder %s378_s27, %s1800_s22  ;;  %p1809_p10 = scmp.lt.s32.totalorder %s1800_s22, %s1800_s22 }
  0x66   : > { %p1803_p7 = pnand %p1801_p4, %p2256_p8  ;;  %p1810_p1 = por %p1809_p10, %p1808_p5 }
  0x68   : > { %p1804_p9 = pneg %p1803_p7 }
  0x6a   : > { %p1811_p3 = pnand %p1810_p1, %p1804_p9 }
  0x6c   : > { %1814 = shalt.err (!%p1811_p3)
}
  0x6d   : > { %1608 = dma.hbm_to_vmem [thread:$0]  (!%p2240_p6), %s2751_s7, 1024, %s378_s27, [#allocation15], %s2124_s29, %s2124_s29, %s2125_s30  }
  0x6e   : > { %s1333_s10 = sadd.s32 4294967294, %s2119_s18   ;;  %s48_s16 = sadd.s32 1, %s2115_s17 }
  0x6f   : > { %s55_s20 = sadd.s32 1, %s2107_s15  ;;  %p50_p1 = scmp.ge.s32.totalorder %s48_s16, 2 }
  0x70   : > { %p62_p3 = scmp.ne.s32.totalorder %s2107_s15, %s2103_s14  ;;  %p63_p11 = scmp.eq.s32.totalorder %s2119_s18, 0 }
  0x71   : > { %p68_p12 = scmp.ne.s32.totalorder %s2103_s14, %s2099_s13  ;;  %s2789_s16 = smov (%p50_p1, %s48_s16), 0 }
  0x72   : > { %2752 = sst [smem:[#allocation30_spill]] %s2789_s16  ;;  %p64_p13 = por %p63_p11, %p62_p3 }
  0x73   : > { %p2753_p0 = scmp.eq.s32.totalorder %s2224_s19, 0  ;;  %s52_s27 = ssub.s32 %s2115_s17, %s2789_s16 }
  0x74   : > { %p276_p4 = scmp.eq.s32.totalorder %s2224_s19, 1  ;;  %p53_p7 = scmp.eq.s32.totalorder %s52_s27, 0 }
  0x75   : > { %p2340_p2 = por %p2753_p0, %p68_p12  ;;  %p282_p9 = scmp.eq.s32.totalorder %s1333_s10, 1 }
  0x76   : > { %p2347_p5 = por %p276_p4, %p62_p3  ;;  %p1635_p10 = scmp.lt.s32.totalorder %s2119_s18, 2 }
  0x77   : > { %s2754_s11 = scalar_select %p2340_p2, 1, 0 }
  0x78   : > { %s2755_s29 = scalar_select %p2347_p5, 1, 0 }
  0x79   : > { %s2353_s30 = scalar_select %p53_p7, %s2107_s15, %s55_s20  }
  0x7a   : > { %p2355_p1 = por %p282_p9, %p68_p12  ;;  %s2360_s24 = sand.u32 1, %s2107_s15  }
  0x7b   : > { %2756 = sst [smem:[#allocation31_spill]] %s2353_s30  ;;  %p2362_p11 = pnand %p1635_p10, %p64_p13 }
  0x7c   : > { %s2757_s12 = scalar_select %p2355_p1, 1, 0 }
  0x7d   : > { %s2758_s26 = scalar_select %p2362_p11, 1, 0 }
  0x7e   : > { %s423_s28 = sand.u32 1, %s2119_s18   ;;  %s1345_s22 = sshll.u32 %s2360_s24, 3 }
  0x7f   : > { %s1346_s25 = sshll.u32 %s2115_s17, 7  ;;  %s427_s9 = scalar_lea.vmem [#allocation5], %s1345_s22 }
  0x80   : > { %s435_s10 = sshll.u32 %s427_s9, 4  ;;  %s2759_s1 = sld [smem:[#allocation32_spill]]  ;;  %s2374_s10 = int_to_ptr.vmem [resolvable:$true] %s435_s10 }
  0x81   : > { %s2376_s5 = scalar_lea.sflag [#allocation6], %s423_s28  ;;  %p2382_p12 = pneg %p2362_p11 }
  0x83   : > { %s2760_s16 = scalar_select %p2382_p12, 1, 0 }
  0x86   : > { %s2372_s3 = scalar_lea.hbm %s2759_s1, %s1346_s25  ;;  %s1820_s9 = scalar_lea.hbm %s2759_s1, 256 }
  0x87   : > { %s1815_s7 = scalar_lea.hbm %s2372_s3, 128  ;;  %p1821_p4 = scmp.lt.u32.totalorder %s2372_s3, %s2759_s1 }
  0x88   : > { %p1816_p3 = scmp.ne.s32.totalorder %s2372_s3, %s1815_s7  ;;  %p1822_p7 = scmp.lt.u32.totalorder %s1820_s9, %s1815_s7 }
  0x89   : > { %p1824_p10 = scmp.lt.u32.totalorder %s1815_s7, %s2372_s3 }
  0x8a   : > { %p1818_p13 = pnand %p2382_p12, %p1816_p3  ;;  %p1823_p9 = por %p1822_p7, %p1821_p4 }
  0x8c   : > { %p1819_p0 = pneg %p1818_p13  ;;  %p1825_p1 = por %p1824_p10, %p1823_p9 }
  0x8e   : > { %p1826_p5 = pnand %p1825_p1, %p1819_p0 }
  0x90   : > { %1829 = shalt.err (!%p1826_p5)
}
  0x91   : > { %s1830_s28 = scalar_lea.vmem %s2374_s10, 128  ;;  %s2126_s22 = smov [#allocation5]  }
  0x92   : > { %p1831_p3 = scmp.ne.s32.totalorder %s2374_s10, %s1830_s28  ;;  %s1835_s25 = sshll.u32 %s2126_s22, 4  ;;  %s1836_s25 = int_to_ptr.vmem [resolvable:$false] %s1835_s25 }
  0x93   : > { %s1837_s27 = scalar_lea.vmem %s1836_s25, 256  ;;  %p1838_p6 = scmp.lt.s32.totalorder %s2374_s10, %s1836_s25 }
  0x94   : > { %p1833_p13 = pnand %p1831_p3, %p2382_p12  ;;  %p1839_p8 = scmp.lt.s32.totalorder %s1837_s27, %s1830_s28 }
  0x96   : > { %p1834_p2 = pneg %p1833_p13  ;;  %p1840_p4 = por %p1839_p8, %p1838_p6 }
  0x98   : > { %p1841_p7 = pnand %p1840_p4, %p1834_p2 }
  0x9a   : > { %1844 = shalt.err (!%p1841_p7)
}
  0x9b   : > { %1618 = dma.hbm_to_vmem [thread:$0]  (!%p2362_p11), %s2372_s3, 128, %s2374_s10, %s2376_s5  }
  0x9c   : > { %s2127_s7 = smov [#allocation10]   ;;  %s2128_s20 = smov [#allocation13]  }
  0x9d   : > { %s343_s9 = sshll.u32 %s2127_s7, 4  ;;  %s367_s1 = sshll.u32 %s2128_s20, 4  ;;  %s344_s9 = int_to_ptr.vmem [resolvable:$true] %s343_s9  ;;  %s2406_s1 = int_to_ptr.vmem [resolvable:$true] %s367_s1 }
  0x9e   : > { %s1845_s28 = scalar_lea.hbm %s2712_s4, 16  ;;  %p2761_p8 = scmp.ne.s32.totalorder %s2749_s21, 0 }
  0x9f   : > { %p1846_p6 = scmp.ne.s32.totalorder %s2712_s4, %s1845_s28  ;;  %p1852_p1 = scmp.lt.u32.totalorder %s1845_s28, %s2712_s4 }
  0xa1   : > { %p1848_p2 = pnand %p1846_p6, %p2761_p8 }
  0xa3   : > { %p1849_p5 = pneg %p1848_p2 }
  0xa5   : > { %p1854_p0 = pnand %p1852_p1, %p1849_p5 }
  0xa7   : > { %1857 = shalt.err (!%p1854_p0)
}
  0xa8   : > { %s1858_s10 = scalar_lea.vmem %s344_s9, 16  ;;  %s1865_s7 = scalar_lea.vmem %s344_s9, 32 }
  0xa9   : > { %p1859_p9 = scmp.ne.s32.totalorder %s344_s9, %s1858_s10  ;;  %p1866_p13 = scmp.lt.s32.totalorder %s344_s9, %s344_s9 }
  0xaa   : > { %p1867_p4 = scmp.lt.s32.totalorder %s1865_s7, %s1858_s10 }
  0xab   : > { %p1861_p10 = pnand %p1859_p9, %p2761_p8 }
  0xac   : > { %p1868_p7 = por %p1867_p4, %p1866_p13 }
  0xad   : > { %p1862_p3 = pneg %p1861_p10 }
  0xaf   : > { %p1869_p11 = pnand %p1868_p7, %p1862_p3 }
  0xb1   : > { %1872 = shalt.err (!%p1869_p11)
}
  0xb2   : > { %p2762_p6 = scmp.ne.s32.totalorder %s2747_s23, 0  ;;  %s1873_s25 = scalar_lea.hbm %s2714_s6, 16 }
  0xb3   : > { %p1874_p2 = scmp.ne.s32.totalorder %s2714_s6, %s1873_s25  ;;  %p1880_p11 = scmp.lt.u32.totalorder %s1873_s25, %s2714_s6 }
  0xb4   : > { %1599 = dma.hbm_to_vmem [thread:$0]  (!%p2762_p6), %s2712_s4, 16, %s344_s9, [#allocation9]  }
  0xb5   : > { %p1876_p5 = pnand %p1874_p2, %p2761_p8 }
  0xb7   : > { %p1877_p1 = pneg %p1876_p5 }
  0xb9   : > { %p1882_p0 = pnand %p1880_p11, %p1877_p1 }
  0xbb   : > { %1885 = shalt.err (!%p1882_p0)
}
  0xbc   : > { %s1886_s9 = scalar_lea.vmem %s2406_s1, 16  ;;  %s1893_s7 = scalar_lea.vmem %s2406_s1, 32 }
  0xbd   : > { %p1887_p9 = scmp.ne.s32.totalorder %s2406_s1, %s1886_s9  ;;  %p1894_p13 = scmp.lt.s32.totalorder %s2406_s1, %s2406_s1 }
  0xbe   : > { %p1895_p4 = scmp.lt.s32.totalorder %s1893_s7, %s1886_s9 }
  0xbf   : > { %p1889_p10 = pnand %p1887_p9, %p2761_p8 }
  0xc0   : > { %p1896_p7 = por %p1895_p4, %p1894_p13 }
  0xc1   : > { %p1890_p3 = pneg %p1889_p10 }
  0xc3   : > { %p1897_p2 = pnand %p1896_p7, %p1890_p3 }
  0xc5   : > { %1900 = shalt.err (!%p1897_p2)
}
  0xc6   : > { %1605 = dma.hbm_to_vmem [thread:$0]  (!%p2762_p6), %s2714_s6, 16, %s2406_s1, [#allocation12]  }
  0xc7   : > { %s2129_s15 = smov [#allocation16]   ;;  %s1342_s25 = sshll.u32 %s2360_s24, 7 }
  0xc8   : > { %s391_s22 = sshll.u32 %s2129_s15, 4  ;;  %s1901_s3 = scalar_lea.hbm %s2716_s8, 16  ;;  %s392_s22 = int_to_ptr.vmem [resolvable:$true] %s391_s22 }
  0xc9   : > { %p1902_p5 = scmp.ne.s32.totalorder %s2716_s8, %s1901_s3  ;;  %p1908_p0 = scmp.lt.u32.totalorder %s1901_s3, %s2716_s8 }
  0xcb   : > { %p1904_p1 = pnand %p1902_p5, %p2761_p8 }
  0xcd   : > { %p1905_p11 = pneg %p1904_p1 }
  0xcf   : > { %p1910_p9 = pnand %p1908_p0, %p1905_p11 }
  0xd1   : > { %1913 = shalt.err (!%p1910_p9)
}
  0xd2   : > { %s1914_s1 = scalar_lea.vmem %s392_s22, 16  ;;  %s1921_s20 = scalar_lea.vmem %s392_s22, 32 }
  0xd3   : > { %p1915_p10 = scmp.ne.s32.totalorder %s392_s22, %s1914_s1  ;;  %p1922_p4 = scmp.lt.s32.totalorder %s392_s22, %s392_s22 }
  0xd4   : > { %p1923_p7 = scmp.lt.s32.totalorder %s1921_s20, %s1914_s1 }
  0xd5   : > { %p1917_p3 = pnand %p1915_p10, %p2761_p8 }
  0xd6   : > { %p1924_p2 = por %p1923_p7, %p1922_p4 }
  0xd7   : > { %p1918_p13 = pneg %p1917_p3 }
  0xd9   : > { %p1925_p12 = pnand %p1924_p2, %p1918_p13 }
  0xdb   : > { %1928 = shalt.err (!%p1925_p12)
}
  0xdc   : > { %1611 = dma.hbm_to_vmem [thread:$0]  (!%p2762_p6), %s2716_s8, 16, %s392_s22, [#allocation15]  }
  0xdd   : > { %s1394_s27 = sshll.u32 %s2115_s17, 11  ;;  %s406_s3 = scalar_lea.vmem [#allocation2], %s1342_s25 }
  0xde   : > { %s413_s21 = sshll.u32 %s406_s3, 4  ;;  %s2473_s7 = scalar_lea.hbm %s2708_s0, %s1394_s27  ;;  %s2475_s21 = int_to_ptr.vmem [resolvable:$true] %s413_s21 }
  0xdf   : > { %s403_s23 = scalar_lea.sflag [#allocation3], %s2360_s24  ;;  %s1929_s30 = scalar_lea.hbm %s2473_s7, 2048 }
  0xe0   : > { %p1930_p12 = scmp.ne.s32.totalorder %s2473_s7, %s1929_s30  ;;  %p2763_p8 = scmp.ne.s32.totalorder %s2760_s16, 0 }
  0xe1   : > { %s1934_s1 = scalar_lea.hbm %s2708_s0, 4096  ;;  %p1935_p1 = scmp.lt.u32.totalorder %s2473_s7, %s2708_s0 }
  0xe2   : > { %p1932_p5 = pnand %p1930_p12, %p2763_p8  ;;  %p1936_p11 = scmp.lt.u32.totalorder %s1934_s1, %s1929_s30 }
  0xe3   : > { %p1938_p9 = scmp.lt.u32.totalorder %s1929_s30, %s2473_s7 }
  0xe4   : > { %p1933_p6 = pneg %p1932_p5  ;;  %p1937_p0 = por %p1936_p11, %p1935_p1 }
  0xe6   : > { %p1939_p10 = por %p1938_p9, %p1937_p0 }
  0xe8   : > { %p1940_p3 = pnand %p1939_p10, %p1933_p6 }
  0xea   : > { %1943 = shalt.err (!%p1940_p3)
}
  0xeb   : > { %s1944_s28 = scalar_lea.vmem %s2475_s21, 2048  ;;  %s2130_s27 = smov [#allocation2]  }
  0xec   : > { %p1945_p13 = scmp.ne.s32.totalorder %s2475_s21, %s1944_s28  ;;  %s1949_s3 = sshll.u32 %s2130_s27, 4  ;;  %s1950_s3 = int_to_ptr.vmem [resolvable:$false] %s1949_s3 }
  0xed   : > { %s1951_s10 = scalar_lea.vmem %s1950_s3, 4096  ;;  %p1952_p2 = scmp.lt.s32.totalorder %s2475_s21, %s1950_s3 }
  0xee   : > { %p1947_p4 = pnand %p1945_p13, %p2763_p8  ;;  %p1953_p12 = scmp.lt.s32.totalorder %s1951_s10, %s1944_s28 }
  0xf0   : > { %p1948_p7 = pneg %p1947_p4  ;;  %p1954_p5 = por %p1953_p12, %p1952_p2 }
  0xf2   : > { %p1955_p1 = pnand %p1954_p5, %p1948_p7 }
  0xf4   : > { %1958 = shalt.err (!%p1955_p1)
}
  0xf5   : > { %s2131_s9 = smov 128   ;;  %s2132_s30 = smov 8  }
  0xf6   : > { %p2764_p6 = scmp.ne.s32.totalorder %s2758_s26, 0  ;;  %s1347_s22 = sshll.u32 %s2360_s24, 2 }
  0xf7   : > { %s1348_s25 = sshll.u32 %s2115_s17, 6  ;;  %s446_s28 = scalar_lea.vmem [#allocation7], %s1347_s22 }
  0xf8   : > { %1615 = dma.hbm_to_vmem [thread:$0]  (!%p2764_p6), %s2473_s7, 2048, %s2475_s21, %s403_s23, %s2131_s9, %s2131_s9, %s2132_s30  }
  0xf9   : > { %s2506_s15 = scalar_lea.hbm %s2710_s2, %s1348_s25  ;;  %s454_s27 = sshll.u32 %s446_s28, 4  ;;  %s455_s27 = int_to_ptr.vmem [resolvable:$true] %s454_s27 }
  0xfa   : > { %s1959_s3 = scalar_lea.hbm %s2506_s15, 64  ;;  %s1964_s7 = scalar_lea.hbm %s2710_s2, 128 }
  0xfb   : > { %p1960_p11 = scmp.ne.s32.totalorder %s2506_s15, %s1959_s3  ;;  %p1965_p10 = scmp.lt.u32.totalorder %s2506_s15, %s2710_s2 }
  0xfc   : > { %p1966_p3 = scmp.lt.u32.totalorder %s1964_s7, %s1959_s3  ;;  %p1968_p4 = scmp.lt.u32.totalorder %s1959_s3, %s2506_s15 }
  0xfd   : > { %p1962_p0 = pnand %p1960_p11, %p2763_p8 }
  0xfe   : > { %p1967_p13 = por %p1966_p3, %p1965_p10 }
  0xff   : > { %p1963_p9 = pneg %p1962_p0 }
 0x100   : > { %p1969_p7 = por %p1968_p4, %p1967_p13 }
 0x102   : > { %p1970_p2 = pnand %p1969_p7, %p1963_p9 }
 0x104   : > { %1973 = shalt.err (!%p1970_p2)
}
 0x105   : > { %s1974_s9 = scalar_lea.vmem %s455_s27, 64  ;;  %s2133_s30 = smov [#allocation7]  }
 0x106   : > { %p1975_p12 = scmp.ne.s32.totalorder %s455_s27, %s1974_s9  ;;  %s1979_s22 = sshll.u32 %s2133_s30, 4  ;;  %s1980_s22 = int_to_ptr.vmem [resolvable:$false] %s1979_s22 }
 0x107   : > { %s1981_s25 = scalar_lea.vmem %s1980_s22, 128  ;;  %p1982_p11 = scmp.lt.s32.totalorder %s455_s27, %s1980_s22 }
 0x108   : > { %p1977_p5 = pnand %p1975_p12, %p2763_p8  ;;  %p1983_p0 = scmp.lt.s32.totalorder %s1981_s25, %s1974_s9 }
 0x10a   : > { %p1978_p1 = pneg %p1977_p5  ;;  %p1984_p6 = por %p1983_p0, %p1982_p11 }
 0x10c   : > { %p1985_p3 = pnand %p1984_p6, %p1978_p1 }
 0x10e   : > { %1988 = shalt.err (!%p1985_p3)
}
 0x10f   : > { %p2765_p10 = scmp.ne.s32.totalorder %s2758_s26, 0  ;;  %s2766_s1 = sld [smem:[#allocation29_spill]] }
 0x111   : > { %1621 = dma.hbm_to_vmem [thread:$0]  (!%p2765_p10), %s2506_s15, 64, %s455_s27, %s2376_s5  }
 0x115   : > { %p2767_p9 = scmp.ne.s32.totalorder %s2766_s1, 0 }
 0x116   : > { %s2529_s16 = sand.u32 (!%p2767_p9), 1, %s2103_s14   ;;  %p2768_p8 = scmp.ne.s32.totalorder (!%p2767_p9), %s2754_s11, 0 }
 0x117   : > { %463 = sbr.rel (%p2767_p9) target bundleno = 1585 (0x631), region = 56  ;;  %s1350_s20 = sshll.u32 (!%p2767_p9), %s2529_s16, 7 }
 0x118   : > { %s466_s28 = scalar_lea.sflag (!%p2767_p9), [#allocation3], %s2529_s16  ;;  %s2533_s3 = scalar_lea.vmem (!%p2767_p9), [#allocation2], %s1350_s20 }
 0x11e   : > { %2070 = dma.done.wait (%p2768_p8), %s466_s28, 2048  }
 0x11f   : > { %2072 = vsyncadd (%p2768_p8), %s466_s28, 4294965248  ;;  %s474_s5 = sand.u32 1, %s2224_s19   ;;  %s2541_s26 = sshll.u32 %s2529_s16, 3 }
 0x120   : > { %s475_s15 = scalar_lea.sflag [#allocation6], %s474_s5  ;;  %s478_s27 = scalar_lea.vmem [#allocation5], %s2541_s26 }
 0x121   : > { %2074 = dma.done.wait (%p2768_p8), %s475_s15, 192  }
 0x122   : > { %2076 = vsyncadd (%p2768_p8), %s475_s15, 4294967104  ;;  %s1352_s21 = sshll.u32 %s2529_s16, 2  ;;  %p2769_p6 = scmp.eq.s32.totalorder %s2224_s19, 0 }
 0x123   : > { %s2549_s24 = scalar_lea.vmem [#allocation7], %s1352_s21 }
 0x124   : > { %2078 = dma.done.wait (%p2769_p6), [#allocation9], 1040   ;;  %p2770_p13 = pmov %p2769_p6 }
 0x125   : > { %p2771_p4 = pmov %p2769_p6 }
 0x126   : > { %2080 = vsyncadd (%p2770_p13), [#allocation9], 4294966256 }
 0x127   : > { %2082 = dma.done.wait (%p2771_p4), [#allocation12], 1040   ;;  %p2772_p7 = pmov %p2771_p4 }
 0x128   : > { %p2773_p2 = pmov %p2771_p4 }
 0x129   : > { %2084 = vsyncadd (%p2772_p7), [#allocation12], 4294966256 }
 0x12a   : > { %2086 = dma.done.wait (%p2773_p2), [#allocation15], 1040   ;;  %p2774_p12 = pmov %p2773_p2 }
 0x12b   : > { %v2134_v0 = vmov 0.0   ;;  %vm2135_vm0 = vmmov 0   ;;  %v1703_v1 = vld [vmem:[#allocation11] sm:$0xff]   ;;  %v1704_v2 = vld [vmem:[#allocation11 + $0x8] sm:$0xff]   ;;  %v1705_v3 = vld [vmem:[#allocation11 + $0x10] sm:$0xff]   ;;  %s562_s19 = scalar_lea.vmem [#allocation18], %s2541_s26 }
 0x12c   : > { %2088 = vsyncadd (%p2774_p12), [#allocation15], 4294966256  ;;  %1447 = vmatprep.subr.bf16.mxu0 %v2134_v0  ;;  %1463 = vmatprep.mubr.msk.bf16.mxu0 %vm2135_vm0, %v2134_v0  ;;  %v1706_v4 = vld [vmem:[#allocation11 + $0x18] sm:$0xff]   ;;  %v564_v5 = vld [vmem:[%s2533_s3] sm:$0xff]  ;;  %s2775_s11 = sld [smem:[#allocation28_spill]]  ;;  %s2776_s9 = sld [smem:[#allocation37_spill]] }
 0x12d   : > { %1467 = vmatprep.subr.bf16.mxu1 %v1703_v1  ;;  %v565_v6 = vld [vmem:[%s2533_s3 + $0x8] sm:$0xff]  ;;  %v1707_v8 = vld [vmem:[#allocation11 + $0x20] sm:$0xff]   ;;  %v1714_v14 = vld [vmem:[#allocation8 + $0x18] sm:$0xff]   ;;  %s1118_s22 = sshll.u32 %s562_s19, 4  ;;  %s1090_s25 = scalar_lea.sflag [#allocation19], %s2529_s16  ;;  %s1119_s22 = int_to_ptr.vmem [resolvable:$true] %s1118_s22 }
 0x12e   : > { %1468 = vmatpush3.bf16.msra.mxu1 %v1703_v1  ;;  %v580_v7 = vpack.c.bf16 %v565_v6, %v564_v5  ;;  %v1711_v9 = vld [vmem:[#allocation8] sm:$0xff]   ;;  %v1712_v10 = vld [vmem:[#allocation8 + $0x8] sm:$0xff]   ;;  %v1713_v12 = vld [vmem:[#allocation8 + $0x10] sm:$0xff]   ;;  %s1989_s1 = scalar_lea.vmem %s1119_s22, 128  ;;  %p2777_p1 = scmp.ne.s32.totalorder %s2755_s29, 0 }
 0x12f   : > { %1469 = vmatprep.subr.bf16.mxu1 %v1704_v2  ;;  %1448 = vmatpush3.bf16.msra.mxu0 %v1711_v9  ;;  %v1708_v11 = vld [vmem:[#allocation11 + $0x28] sm:$0xff]   ;;  %v1709_v13 = vld [vmem:[#allocation11 + $0x30] sm:$0xff]   ;;  %v1710_v15 = vld [vmem:[#allocation11 + $0x38] sm:$0xff]   ;;  %p1990_p5 = scmp.ne.s32.totalorder %s1119_s22, %s1989_s1  ;;  %s2136_s20 = smov [#allocation18]  }
 0x130   : > { %1483 = vmatprep.mubr.bf16.mxu1 %v580_v7  ;;  %1449 = vmatprep.subr.bf16.mxu0 %v2134_v0  ;;  %v1715_v16 = vld [vmem:[#allocation8 + $0x20] sm:$0xff]   ;;  %v566_v17 = vld [vmem:[%s2533_s3 + $0x10] sm:$0xff]  ;;  %v568_v19 = vld [vmem:[%s2533_s3 + $0x20] sm:$0xff]  ;;  %s1993_s28 = sshll.u32 %s2136_s20, 4  ;;  %s1994_s28 = int_to_ptr.vmem [resolvable:$false] %s1993_s28 }
 0x131   : > { %v567_v18 = vld [vmem:[%s2533_s3 + $0x18] sm:$0xff]  ;;  %v569_v20 = vld [vmem:[%s2533_s3 + $0x28] sm:$0xff]  ;;  %v1716_v22 = vld [vmem:[#allocation8 + $0x28] sm:$0xff]   ;;  %p1991_p11 = pnand %p1990_p5, %p2777_p1  ;;  %p1996_p3 = scmp.lt.s32.totalorder %s1119_s22, %s1994_s28 }
 0x132   : > { %1470 = vmatpush3.bf16.msra.mxu1 %v1704_v2  ;;  %v581_v21 = vpack.c.bf16 %v567_v18, %v566_v17  ;;  %v582_v23 = vpack.c.bf16 %v569_v20, %v568_v19  ;;  %v1717_v24 = vld [vmem:[#allocation8 + $0x30] sm:$0xff]   ;;  %v570_v25 = vld [vmem:[%s2533_s3 + $0x30] sm:$0xff]  ;;  %v571_v26 = vld [vmem:[%s2533_s3 + $0x38] sm:$0xff]  ;;  %s1390_s7 = sshll.u32 %s2775_s11, 7 }
 0x133   : > { %1471 = vmatprep.subr.bf16.mxu1 %v1705_v3  ;;  %1450 = vmatpush3.bf16.msra.mxu0 %v1712_v10  ;;  %v572_v27 = vld [vmem:[%s2533_s3 + $0x40] sm:$0xff]  ;;  %v573_v28 = vld [vmem:[%s2533_s3 + $0x48] sm:$0xff]  ;;  %v583_v29 = vpack.c.bf16 %v571_v26, %v570_v25  ;;  %v1718_v30 = vld [vmem:[#allocation8 + $0x38] sm:$0xff]   ;;  %s2631_s30 = scalar_lea.hbm %s2776_s9, %s1390_s7  ;;  %p1992_p0 = pneg %p1991_p11 }
 0x134   : > { %1451 = vmatprep.subr.bf16.mxu0 %v2134_v0  ;;  %v588_v31 = vld [vmem:[%s478_s27] sm:$0xff]  ;;  %v584_v32 = vpack.c.bf16 %v573_v28, %v572_v27  ;;  %v574_v34 = vld [vmem:[%s2533_s3 + $0x50] sm:$0xff]  ;;  %v575_v35 = vld [vmem:[%s2533_s3 + $0x58] sm:$0xff] }
 0x135   : > { %v589_v33 = vpack.c.bf16 %v588_v31, %v588_v31  ;;  %v576_v36 = vld [vmem:[%s2533_s3 + $0x60] sm:$0xff]  ;;  %v577_v37 = vld [vmem:[%s2533_s3 + $0x68] sm:$0xff]  ;;  %v585_v38 = vpack.c.bf16 %v575_v35, %v574_v34  ;;  %v578_v40 = vld [vmem:[%s2533_s3 + $0x70] sm:$0xff] }
 0x136   : > { %1472 = vmatpush3.bf16.msra.mxu1 %v1705_v3  ;;  %v586_v39 = vpack.c.bf16 %v577_v37, %v576_v36  ;;  %v579_v41 = vld [vmem:[%s2533_s3 + $0x78] sm:$0xff]  ;;  %v878_v28 = vld [vmem:[%s2549_s24] sm:$0xf]  ;;  %s1995_s3 = scalar_lea.vmem %s1994_s28, 256 }
 0x137   : > { %1473 = vmatprep.subr.bf16.mxu1 %v1706_v4  ;;  %1452 = vmatpush3.bf16.msra.mxu0 %v1713_v12  ;;  %v587_v42 = vpack.c.bf16 %v579_v41, %v578_v40  ;;  %v1370_v44 = vld [vmem:[#allocation13] ss:$0 sm:$0xff]  ;;  %v1361_v25 = vld [vmem:[#allocation10] ss:$0 sm:$0xff]  ;;  %p1997_p10 = scmp.lt.s32.totalorder %s1995_s3, %s1989_s1 }
 0x138   : > { %1453 = vmatprep.subr.bf16.mxu0 %v2134_v0 }
 0x139   : > { %p1998_p9 = por %p1997_p10, %p1996_p3 }
 0x13a   : > { %1474 = vmatpush3.bf16.msra.mxu1 %v1706_v4 }
 0x13b   : > { %1475 = vmatprep.subr.bf16.mxu1 %v1707_v8  ;;  %1454 = vmatpush3.bf16.msra.mxu0 %v1714_v14  ;;  %p1999_p8 = pnand %p1998_p9, %p1992_p0 }
 0x13c   : > { %1455 = vmatprep.subr.bf16.mxu0 %v2134_v0 }
 0x13e   : > { %1476 = vmatpush3.bf16.msra.mxu1 %v1707_v8 }
 0x13f   : > { %1477 = vmatprep.subr.bf16.mxu1 %v1708_v11  ;;  %1456 = vmatpush3.bf16.msra.mxu0 %v1715_v16 }
 0x140   : > { %1457 = vmatprep.subr.bf16.mxu0 %v2134_v0 }
 0x142   : > { %1478 = vmatpush3.bf16.msra.mxu1 %v1708_v11 }
 0x143   : > { %1479 = vmatprep.subr.bf16.mxu1 %v1709_v13  ;;  %1458 = vmatpush3.bf16.msra.mxu0 %v1716_v22 }
 0x144   : > { %1459 = vmatprep.subr.bf16.mxu0 %v2134_v0 }
 0x146   : > { %1480 = vmatpush3.bf16.msra.mxu1 %v1709_v13 }
 0x147   : > { %1481 = vmatprep.subr.bf16.mxu1 %v1710_v15  ;;  %1460 = vmatpush3.bf16.msra.mxu0 %v1717_v24 }
 0x148   : > { %1461 = vmatprep.subr.bf16.mxu0 %v2134_v0 }
 0x14a   : > { %1482 = vmatpush3.bf16.msra.mxu1 %v1710_v15 }
 0x14b   : > { %1519 = vmatprep.subr.bf16.mxu1 %v2134_v0  ;;  %1462 = vmatpush3.bf16.msra.mxu0 %v1718_v30 }
 0x14c   : > { %1499 = vmatprep.subr.bf16.mxu0 %v2134_v0 }
 0x14d   : > { %1484 = vmatmul.mubr.bf16.vlgmr.msra.gmra.mrb[0].mxu1 %v581_v21 }
 0x14e   : > { %1487 = vmatprep.mubr.bf16.mxu1 %v582_v23  ;;  %1520 = vmatpush3.bf16.msra.mxu1 %v580_v7 }
 0x14f   : > { %1521 = vmatprep.subr.bf16.mxu1 %v2134_v0  ;;  %1464 = vmatmul.mubr.bf16.vlgmr.msra.gmra.mrb[0].mxu0 %v589_v33 }
 0x150   : > { %1515 = vmatprep.mubr.msk.bf16.mxu0 %vm2135_vm0, %v2134_v0 }
 0x152   : > { %1522 = vmatpush3.bf16.msra.mxu1 %v581_v21 }
 0x153   : > { %1523 = vmatprep.subr.bf16.mxu1 %v2134_v0 }
 0x155   : > { %1488 = vmatmul.mubr.bf16.gmra.mrb[4].mxu1 %v583_v29 }
 0x156   : > { %1491 = vmatprep.mubr.bf16.mxu1 %v584_v32  ;;  %1524 = vmatpush3.bf16.msra.mxu1 %v582_v23 }
 0x157   : > { %1525 = vmatprep.subr.bf16.mxu1 %v2134_v0 }
 0x15a   : > { %1526 = vmatpush3.bf16.msra.mxu1 %v583_v29  ;;  %v879_v29 = vunpack.c.l.bf16 %v878_v28 }
 0x15b   : > { %1527 = vmatprep.subr.bf16.mxu1 %v2134_v0 }
 0x15d   : > { %1492 = vmatmul.mubr.bf16.gmra.mrb[8].mxu1 %v585_v38 }
 0x15e   : > { %1495 = vmatprep.mubr.bf16.mxu1 %v586_v39  ;;  %1528 = vmatpush3.bf16.msra.mxu1 %v584_v32 }
 0x15f   : > { %1529 = vmatprep.subr.bf16.mxu1 %v2134_v0 }
 0x162   : > { %1530 = vmatpush3.bf16.msra.mxu1 %v585_v38 }
 0x163   : > { %1531 = vmatprep.subr.bf16.mxu1 %v2134_v0 }
 0x165   : > { %1496 = vmatmul.mubr.bf16.gmra.mrb[12].mxu1 %v587_v42 }
 0x166   : > { %1535 = vmatprep.mubr.msk.bf16.mxu1 %vm2135_vm0, %v2134_v0  ;;  %1532 = vmatpush3.bf16.msra.mxu1 %v586_v39 }
 0x167   : > { %1533 = vmatprep.subr.bf16.mxu1 %v2134_v0 }
 0x16a   : > { %1534 = vmatpush3.bf16.msra.mxu1 %v587_v42  ;;  %v1719_v42 = vld [vmem:[#allocation14] sm:$0xff]  }
 0x16b   : > { %1539 = vmatprep.subr.bf16.mxu1 %v2134_v0 }
 0x220   : > { %v1485_v43 = vpop.f32.mrb[0].mxu1 }
 0x221   : > { %v806_v45 = vpop.f32.mrb[1].mxu1  ;;  %v815_v47 = vadd.f32 %v1485_v43, %v1370_v44 }
 0x222   : > { %v1486_v46 = vpop.f32.mrb[2].mxu1  ;;  %v807_v50 = vadd.f32 %v1370_v44, %v806_v45  ;;  %v695_v61 = vpop.f32.mrb[0].mxu0  ;;  %v1721_v45 = vld [vmem:[#allocation14 + $0x10] sm:$0xff]  }
 0x223   : > { %v818_v48 = vadd.f32 %v1486_v46, %v1370_v44  ;;  %v809_v49 = vpop.f32.mrb[3].mxu1  ;;  %v1465_v63 = vpop.f32.mrb[1].mxu0  ;;  %v696_v26 = vadd.f32 %v1361_v25, %v695_v61  ;;  %v1722_v46 = vld [vmem:[#allocation14 + $0x18] sm:$0xff]  }
 0x224   : > { %v810_v51 = vadd.f32 %v1370_v44, %v809_v49  ;;  %v698_v2 = vpop.f32.mrb[2].mxu0  ;;  %v1725_v49 = vld [vmem:[#allocation14 + $0x30] sm:$0xff]  }
 0x225   : > { %v871_v52 = vpack.c.bf16 %v818_v48, %v815_v47  ;;  %v1466_v4 = vpop.f32.mrb[3].mxu0  ;;  %v869_v27 = vpack.c.bf16 %v696_v26, %v696_v26  ;;  %v1723_v47 = vld [vmem:[#allocation14 + $0x20] sm:$0xff]   ;;  %v1724_v48 = vld [vmem:[#allocation14 + $0x28] sm:$0xff]  }
 0x226   : > { %v870_v53 = vpack.c.bf16 %v810_v51, %v807_v50  ;;  %v1726_v50 = vld [vmem:[#allocation14 + $0x38] sm:$0xff]  }
 0x228   : > { %1500 = vmatpush3.bf16.xpose.msra.mxu0 %v870_v53  ;;  %v1489_v54 = vpop.f32.mrb[4].mxu1 }
 0x229   : > { %v831_v55 = vadd.f32 %v1489_v54, %v1370_v44  ;;  %v822_v56 = vpop.f32.mrb[5].mxu1  ;;  %1501 = vmatprep.subr.bf16.mxu0 %v2134_v0 }
 0x22a   : > { %v823_v57 = vadd.f32 %v1370_v44, %v822_v56  ;;  %v1490_v58 = vpop.f32.mrb[6].mxu1 }
 0x22b   : > { %v834_v59 = vadd.f32 %v1490_v58, %v1370_v44  ;;  %v825_v60 = vpop.f32.mrb[7].mxu1 }
 0x22c   : > { %v826_v62 = vadd.f32 %v1370_v44, %v825_v60 }
 0x22d   : > { %v873_v1 = vpack.c.bf16 %v834_v59, %v831_v55 }
 0x22e   : > { %v872_v3 = vpack.c.bf16 %v826_v62, %v823_v57 }
 0x230   : > { %1502 = vmatpush3.bf16.xpose.msra.mxu0 %v871_v52  ;;  %v1493_v5 = vpop.f32.mrb[8].mxu1 }
 0x231   : > { %1503 = vmatprep.subr.bf16.mxu0 %v2134_v0  ;;  %v847_v6 = vadd.f32 %v1493_v5, %v1370_v44  ;;  %v838_v7 = vpop.f32.mrb[9].mxu1 }
 0x232   : > { %v839_v8 = vadd.f32 %v1370_v44, %v838_v7  ;;  %v1494_v9 = vpop.f32.mrb[10].mxu1 }
 0x233   : > { %v850_v10 = vadd.f32 %v1494_v9, %v1370_v44  ;;  %v841_v11 = vpop.f32.mrb[11].mxu1 }
 0x234   : > { %v842_v12 = vadd.f32 %v1370_v44, %v841_v11 }
 0x235   : > { %v875_v13 = vpack.c.bf16 %v850_v10, %v847_v6 }
 0x236   : > { %v874_v14 = vpack.c.bf16 %v842_v12, %v839_v8 }
 0x238   : > { %1504 = vmatpush3.bf16.xpose.msra.mxu0 %v872_v3  ;;  %v1497_v15 = vpop.f32.mrb[12].mxu1 }
 0x239   : > { %1505 = vmatprep.subr.bf16.mxu0 %v2134_v0  ;;  %v863_v16 = vadd.f32 %v1497_v15, %v1370_v44  ;;  %v854_v17 = vpop.f32.mrb[13].mxu1 }
 0x23a   : > { %v855_v18 = vadd.f32 %v1370_v44, %v854_v17  ;;  %v1498_v19 = vpop.f32.mrb[14].mxu1 }
 0x23b   : > { %v866_v20 = vadd.f32 %v1498_v19, %v1370_v44  ;;  %v857_v21 = vpop.f32.mrb[15].mxu1 }
 0x23c   : > { %v858_v22 = vadd.f32 %v1370_v44, %v857_v21  ;;  %v1720_v44 = vld [vmem:[#allocation14 + $0x8] sm:$0xff]  }
 0x23d   : > { %v877_v23 = vpack.c.bf16 %v866_v20, %v863_v16 }
 0x23e   : > { %v876_v24 = vpack.c.bf16 %v858_v22, %v855_v18 }
 0x240   : > { %1506 = vmatpush3.bf16.xpose.msra.mxu0 %v873_v1 }
 0x241   : > { %1507 = vmatprep.subr.bf16.mxu0 %v2134_v0 }
 0x248   : > { %1508 = vmatpush3.bf16.xpose.msra.mxu0 %v874_v14 }
 0x249   : > { %1509 = vmatprep.subr.bf16.mxu0 %v2134_v0 }
 0x250   : > { %1510 = vmatpush3.bf16.xpose.msra.mxu0 %v875_v13 }
 0x251   : > { %1511 = vmatprep.subr.bf16.mxu0 %v2134_v0 }
 0x258   : > { %1512 = vmatpush3.bf16.xpose.msra.mxu0 %v876_v24 }
 0x259   : > { %1513 = vmatprep.subr.bf16.mxu0 %v2134_v0 }
 0x260   : > { %1514 = vmatpush3.bf16.xpose.msra.mxu0 %v877_v23 }
 0x267   : > { %1516 = vmatmul.mubr.bf16.vlgmr.msra.gmra.mrb[4].mxu0 %v869_v27 }
 0x33a   : > { %v914_v30 = vpop.f32.mrb[4].mxu0 }
 0x33b   : > { %v915_v31 = vadd.f32 %v914_v30, %v879_v29  ;;  %v1517_v32 = vpop.f32.mrb[5].mxu0 }
 0x33c   : > { %v917_v33 = vpop.f32.mrb[6].mxu0 }
 0x33d   : > { %920 = vmax.xlane.f32.xlu0 %v915_v31  ;;  %v1518_v34 = vpop.f32.mrb[7].mxu0 }
 0x3ca   : > { %v921_v35 = vpop.xlane.xlu0 %920 }
 0x3cb   : > { %v922_v36 = vsub.f32 %v915_v31, %v921_v35 }
 0x3cd   : > { %v923_v37 = vmul.f32 1.442695, %v922_v36 }
 0x3cf   : > { %1727 = vpow2.f32 %v923_v37 }
 0x3d9   : > { %v1728_v38 = vpop.eup %1727 }
 0x3da   : > { %925 = vadd.xlane.f32.xlu0 %v1728_v38 }
 0x467   : > { %v926_v39 = vpop.xlane.xlu0 %925 }
 0x468   : > { %1729 = vrcp.f32 %v926_v39 }
 0x472   : > { %v1730_v40 = vpop.eup %1729 }
 0x473   : > { %v928_v41 = vmul.f32 %v1730_v40, %v1728_v38 }
 0x475   : > { %v930_v43 = vpack.c.bf16 %v928_v41, %v928_v41  ;;  %929 = vst [vmem:[%s562_s19] sm:$0xff] %v928_v41 }
 0x477   : > { %1536 = vmatmul.mubr.bf16.vlgmr.msra.gmra.mrb[16].mxu1 %v930_v43 }
 0x478   : > { %1540 = vmatpush3.bf16.msra.mxu1 %v1719_v42  ;;  %1555 = vmatprep.mubr.msk.bf16.mxu1 %vm2135_vm0, %v2134_v0 }
 0x479   : > { %1541 = vmatprep.subr.bf16.mxu1 %v2134_v0 }
 0x47c   : > { %1542 = vmatpush3.bf16.msra.mxu1 %v1720_v44 }
 0x47d   : > { %1543 = vmatprep.subr.bf16.mxu1 %v2134_v0 }
 0x480   : > { %1544 = vmatpush3.bf16.msra.mxu1 %v1721_v45 }
 0x481   : > { %1545 = vmatprep.subr.bf16.mxu1 %v2134_v0 }
 0x484   : > { %1546 = vmatpush3.bf16.msra.mxu1 %v1722_v46 }
 0x485   : > { %1547 = vmatprep.subr.bf16.mxu1 %v2134_v0 }
 0x488   : > { %1548 = vmatpush3.bf16.msra.mxu1 %v1723_v47 }
 0x489   : > { %1549 = vmatprep.subr.bf16.mxu1 %v2134_v0 }
 0x48c   : > { %1550 = vmatpush3.bf16.msra.mxu1 %v1724_v48 }
 0x48d   : > { %1551 = vmatprep.subr.bf16.mxu1 %v2134_v0 }
 0x490   : > { %1552 = vmatpush3.bf16.msra.mxu1 %v1725_v49 }
 0x491   : > { %1553 = vmatprep.subr.bf16.mxu1 %v2134_v0 }
 0x494   : > { %1554 = vmatpush3.bf16.msra.mxu1 %v1726_v50 }
 0x54a   : > { %v965_v51 = vpop.f32.mrb[16].mxu1 }
 0x54b   : > { %v971_v52 = vpack.c.bf16 %v965_v51, %v965_v51  ;;  %v1537_v53 = vpop.f32.mrb[17].mxu1 }
 0x54c   : > { %v968_v54 = vpop.f32.mrb[18].mxu1 }
 0x54d   : > { %v1538_v55 = vpop.f32.mrb[19].mxu1  ;;  %1556 = vmatmul.mubr.bf16.vlgmr.msra.gmra.mrb[20].mxu1 %v971_v52 }
 0x54e   : > { %2002 = shalt.err (!%p1999_p8)
}
 0x54f   : > { %s2003_s5 = scalar_lea.hbm %s2631_s30, 128  ;;  %s2007_s21 = scalar_lea.hbm %s2776_s9, 256 }
 0x550   : > { %p2004_p6 = scmp.ne.s32.totalorder %s2631_s30, %s2003_s5  ;;  %p2008_p7 = scmp.lt.u32.totalorder %s2631_s30, %s2776_s9 }
 0x551   : > { %p2009_p2 = scmp.lt.u32.totalorder %s2007_s21, %s2003_s5  ;;  %p2011_p5 = scmp.lt.u32.totalorder %s2003_s5, %s2631_s30 }
 0x552   : > { %p2005_p13 = pnand %p2004_p6, %p2777_p1 }
 0x553   : > { %p2010_p12 = por %p2009_p2, %p2008_p7 }
 0x554   : > { %p2006_p4 = pneg %p2005_p13 }
 0x555   : > { %p2012_p11 = por %p2011_p5, %p2010_p12 }
 0x557   : > { %p2013_p0 = pnand %p2012_p11, %p2006_p4 }
 0x559   : > { %2016 = shalt.err (!%p2013_p0)
}
 0x55a   : > { %1590 = dma.vmem_to_hbm [thread:$0]  (%p2777_p1), %s1119_s22, 128, %s2631_s30, %s1090_s25   ;;  %v1379_v0 = vld [vmem:[#allocation16] ss:$0 sm:$0xff] }
 0x55b   : > { %s555_s23 = scalar_lea.vmem [#allocation17], %s2541_s26  ;;  %s2778_s28 = sld [smem:[#allocation36_spill]] }
 0x55c   : > { %s1104_s10 = sshll.u32 %s555_s23, 4  ;;  %s1085_s30 = scalar_lea.sflag [#allocation4], %s2529_s16  ;;  %s2661_s10 = int_to_ptr.vmem [resolvable:$true] %s1104_s10 }
 0x55d   : > { %s2017_s26 = scalar_lea.vmem %s2661_s10, 128  ;;  %s2137_s11 = smov [#allocation17]  }
 0x55e   : > { %p2018_p3 = scmp.ne.s32.totalorder %s2661_s10, %s2017_s26  ;;  %s2021_s22 = sshll.u32 %s2137_s11, 4  ;;  %s2022_s22 = int_to_ptr.vmem [resolvable:$false] %s2021_s22 }
 0x55f   : > { %s2023_s25 = scalar_lea.vmem %s2022_s22, 256  ;;  %p2024_p8 = scmp.lt.s32.totalorder %s2661_s10, %s2022_s22 }
 0x560   : > { %p2019_p10 = pnand %p2018_p3, %p2777_p1  ;;  %p2025_p6 = scmp.lt.s32.totalorder %s2023_s25, %s2017_s26 }
 0x561   : > { %s2659_s3 = scalar_lea.hbm %s2778_s28, %s1390_s7 }
 0x562   : > { %p2020_p9 = pneg %p2019_p10  ;;  %p2026_p13 = por %p2025_p6, %p2024_p8 }
 0x564   : > { %p2027_p4 = pnand %p2026_p13, %p2020_p9 }
 0x620   : > { %v1077_v56 = vpop.f32.mrb[20].mxu1 }
 0x621   : > { %v1078_v57 = vadd.f32 %v1379_v0, %v1077_v56  ;;  %v1557_v58 = vpop.f32.mrb[21].mxu1 }
 0x622   : > { %v1080_v59 = vpop.f32.mrb[22].mxu1 }
 0x623   : > { %1083 = vst [vmem:[%s555_s23] sm:$0xff] %v1078_v57  ;;  %v1558_v60 = vpop.f32.mrb[23].mxu1 }
 0x624   : > { %2030 = shalt.err (!%p2027_p4)
}
 0x625   : > { %s2031_s16 = scalar_lea.hbm %s2659_s3, 128  ;;  %s2035_s15 = scalar_lea.hbm %s2778_s28, 256 }
 0x626   : > { %p2032_p7 = scmp.ne.s32.totalorder %s2659_s3, %s2031_s16  ;;  %p2036_p5 = scmp.lt.u32.totalorder %s2659_s3, %s2778_s28 }
 0x627   : > { %p2037_p11 = scmp.lt.u32.totalorder %s2035_s15, %s2031_s16  ;;  %p2039_p3 = scmp.lt.u32.totalorder %s2031_s16, %s2659_s3 }
 0x628   : > { %p2033_p2 = pnand %p2032_p7, %p2777_p1 }
 0x629   : > { %p2038_p0 = por %p2037_p11, %p2036_p5 }
 0x62a   : > { %p2034_p12 = pneg %p2033_p2 }
 0x62b   : > { %p2040_p10 = por %p2039_p3, %p2038_p0 }
 0x62d   : > { %p2041_p9 = pnand %p2040_p10, %p2034_p12 }
 0x62f   : > { %2044 = shalt.err (!%p2041_p9)
}
 0x630   : > { %1589 = dma.vmem_to_hbm [thread:$0]  (%p2777_p1), %s2661_s10, 128, %s2659_s3, %s1085_s30  }
 0x631 PF: > { %s1130_s24 = sand.u32 1, %s2099_s13   ;;  %p2779_p8 = scmp.ne.s32.totalorder %s2757_s12, 0 }
 0x632   : > { %p2780_p6 = scmp.ge.s32.totalorder %s2119_s18, 2  ;;  %s1131_s19 = scalar_lea.sflag [#allocation4], %s1130_s24 }
 0x634   : > { %p1623_p13 = pnand %p2780_p6, %p2779_p8 }
 0x636   : > { %2090 = dma.done.wait (!%p1623_p13), %s1131_s19, 128  }
 0x637   : > { %2092 = vsyncadd (!%p1623_p13), %s1131_s19, 4294967168  ;;  %s1140_s23 = scalar_lea.sflag [#allocation19], %s1130_s24 }
 0x638   : > { %2094 = dma.done.wait (!%p1623_p13), %s1140_s23, 128  }
 0x639   : > { %2096 = vsyncadd (!%p1623_p13), %s1140_s23, 4294967168  ;;  %s36_s18 = sadd.s32 1, %s2119_s18   ;;  %s2781_s29 = sld [smem:[#allocation27_spill]] }
 0x63a   : > { %p33_p4 = scmp.ge.s32.totalorder %s36_s18, 4   ;;  %s2782_s15 = sld [smem:[#allocation31_spill]] }
 0x63b   : > { %s2783_s10 = sld [smem:[#allocation30_spill]]  ;;  %s2784_s13 = smov %s2103_s14 }
 0x63c   : > { %s2786_s16 = smov %s2115_s17  ;;  %35 = sbr.rel (!%p33_p4) target bundleno = 20 (0x14), region = 166 }
 0x63f   : > { %s2785_s14 = smov %s2781_s29 }
 0x641   : > { %s2787_s17 = smov %s2783_s10 }
 0x643   :  { %1145 = vsyncpa [#allocation3], 1 }
 0x644   :  { %1147 = vsyncpa [#allocation3 + $0x1], 1 }
 0x645   :  { %1148 = vsyncpa [#allocation6], 1 }
 0x646   :  { %1150 = vsyncpa [#allocation6 + $0x1], 1 }
 0x647   :  { %1151 = vsyncpa [#allocation9], 1 }
 0x648   :  { %1152 = vsyncpa [#allocation12], 1 }
 0x649   :  { %1153 = vsyncpa [#allocation15], 1 }
 0x64a   :  { %1154 = vsyncpa [#allocation4], 1 }
 0x64b   :  { %1156 = vsyncpa [#allocation4 + $0x1], 1 }
 0x64c   :  { %1157 = vsyncpa [#allocation19], 1 }
 0x64d   :  { %1159 = vsyncpa [#allocation19 + $0x1], 1 }

// kernel: tpu_custom_call.1
= control target key start
LH: loop header
LB: loop body
LE: loop exit
PB: predicated region body
PF: predicated region fallthrough
CT: control target
= control target key end

     0   :  { %s2708_s0 = inlined_call_operand.hbm [shape: f32[2,128,128], index: 0, kind: input, shape index: {}]   ;;  %s2709_s1 = inlined_call_operand.hbm [shape: f32[2,8,128], index: 1, kind: input, shape index: {}]   ;;  %s2710_s2 = inlined_call_operand.hbm [shape: bf16[2,8,128], index: 2, kind: input, shape index: {}]   ;;  %s2711_s3 = inlined_call_operand.hbm [shape: bf16[128,128], index: 3, kind: input, shape index: {}]   ;;  %s2712_s4 = inlined_call_operand.hbm [shape: f32[1,128], index: 4, kind: input, shape index: {}]   ;;  %s2713_s5 = inlined_call_operand.hbm [shape: bf16[128,128], index: 5, kind: input, shape index: {}]   ;;  %s2714_s6 = inlined_call_operand.hbm [shape: f32[1,128], index: 6, kind: input, shape index: {}]   ;;  %s2715_s7 = inlined_call_operand.hbm [shape: bf16[128,128], index: 7, kind: input, shape index: {}]   ;;  %s2716_s8 = inlined_call_operand.hbm [shape: f32[1,128], index: 8, kind: input, shape index: {}]   ;;  %s2717_s9 = inlined_call_operand.hbm [shape: f32[2,8,128], index: 9, kind: output, shape index: {0}]   ;;  %s2718_s10 = inlined_call_operand.hbm [shape: f32[2,8,128], index: 10, kind: output, shape index: {1}]  }
   0x1   :  { %2737 = sst [smem:[#allocation32_spill]] %s2709_s1 }
   0x2   :  { %2738 = sst [smem:[#allocation33_spill]] %s2711_s3 }
   0x3   :  { %2739 = sst [smem:[#allocation34_spill]] %s2713_s5 }
   0x4   :  { %2740 = sst [smem:[#allocation35_spill]] %s2715_s7 }
   0x5   :  { %2741 = sst [smem:[#allocation36_spill]] %s2717_s9 }
   0x6   :  { %2742 = sst [smem:[#allocation37_spill]] %s2718_s10 }
   0x7   :  { %16 = vsyncpa [#allocation3], 0 }
   0x8   :  { %18 = vsyncpa [#allocation3 + $0x1], 0 }
   0x9   :  { %19 = vsyncpa [#allocation6], 0 }
   0xa   :  { %21 = vsyncpa [#allocation6 + $0x1], 0 }
   0xb   :  { %22 = vsyncpa [#allocation9], 0 }
   0xc   :  { %23 = vsyncpa [#allocation12], 0 }
   0xd   :  { %24 = vsyncpa [#allocation15], 0 }
   0xe   :  { %25 = vsyncpa [#allocation4], 0 }
   0xf   :  { %27 = vsyncpa [#allocation4 + $0x1], 0 }
  0x10   :  { %28 = vsyncpa [#allocation19], 0 }
  0x11   :  { %30 = vsyncpa [#allocation19 + $0x1], 0  ;;  %s2193_s13 = smov 0   ;;  %s2195_s14 = smov 0  }
  0x12   :  { %s2197_s15 = smov 0   ;;  %s2199_s16 = smov 0  }
  0x13   :  { %s2201_s17 = smov 0   ;;  %s2203_s18 = smov 0  }
  0x14 LB: > { %2743 = sst [smem:[#allocation27_spill]] %s2107_s15  ;;  %s2224_s19 = sadd.s32 4294967295, %s2119_s18   ;;  %s2119_s18 = sphi %s2203_s18, %s36_s18   ;;  %s2115_s17 = sphi %s2201_s17, %s2787_s17   ;;  %s2111_s16 = sphi %s2199_s16, %s2786_s16   ;;  %s2107_s15 = sphi %s2197_s15, %s2782_s15   ;;  %s2103_s14 = sphi %s2195_s14, %s2785_s14   ;;  %s2099_s13 = sphi %s2193_s13, %s2784_s13  }
  0x15   : > { %2744 = sst [smem:[#allocation28_spill]] %s2111_s16  ;;  %p1334_p0 = scmp.ge.s32.totalorder %s2119_s18, 1 }
  0x16   : > { %p2723_p1 = scmp.eq.s32.totalorder %s2224_s19, 0  ;;  %p317_p2 = scmp.lt.s32.totalorder %s2119_s18, 3 }
  0x17   : > { %s2121_s21 = smov [#allocation8]   ;;  %s2122_s24 = smov [#allocation11]  }
  0x18   : > { %p2229_p3 = pnand %p1334_p0, %p317_p2  ;;  %s329_s22 = sshll.u32 %s2121_s21, 4  ;;  %s2233_s22 = int_to_ptr.vmem [resolvable:$true] %s329_s22 }
  0x19   : > { %s353_s25 = sshll.u32 %s2122_s24, 4  ;;  %s2123_s26 = smov [#allocation14]   ;;  %s2244_s25 = int_to_ptr.vmem [resolvable:$true] %s353_s25 }
  0x1a   : > { %s2745_s20 = scalar_select %p2229_p3, 1, 0 }
  0x1b   : > { %p1593_p4 = pneg %p2229_p3  ;;  %s2246_s27 = sshll.u32 %s2123_s26, 4  ;;  %s378_s27 = int_to_ptr.vmem [resolvable:$true] %s2246_s27 }
  0x1c   : > { %2746 = sst [smem:[#allocation29_spill]] %s2745_s20  ;;  %s2748_s3 = sld [smem:[#allocation33_spill]] }
  0x1d   : > { %p2240_p6 = pnand %p1593_p4, %p2723_p1 }
  0x1f   : > { %s2747_s23 = scalar_select %p2240_p6, 1, 0 }
  0x20   : > { %p2256_p8 = pneg %p2240_p6 }
  0x22   : > { %s1731_s30 = scalar_lea.hbm %s2748_s3, 1024 }
  0x23   : > { %p1732_p7 = scmp.ne.s32.totalorder %s2748_s3, %s1731_s30  ;;  %p1738_p11 = scmp.lt.u32.totalorder %s1731_s30, %s2748_s3 }
  0x24   : > { %s2749_s21 = scalar_select %p2256_p8, 1, 0 }
  0x25   : > { %p1734_p9 = pnand %p2256_p8, %p1732_p7 }
  0x27   : > { %p1735_p10 = pneg %p1734_p9 }
  0x29   : > { %p1740_p12 = pnand %p1738_p11, %p1735_p10 }
  0x2b   : > { %1743 = shalt.err (!%p1740_p12)
}
  0x2c   : > { %s1744_s28 = scalar_lea.vmem %s2233_s22, 1024  ;;  %p1752_p4 = scmp.lt.s32.totalorder %s2233_s22, %s2233_s22 }
  0x2d   : > { %p1745_p13 = scmp.ne.s32.totalorder %s2233_s22, %s1744_s28  ;;  %p1753_p5 = scmp.lt.s32.totalorder %s1744_s28, %s1744_s28 }
  0x2f   : > { %p1747_p0 = pnand %p1745_p13, %p2256_p8  ;;  %p1754_p7 = por %p1753_p5, %p1752_p4 }
  0x31   : > { %p1748_p2 = pneg %p1747_p0 }
  0x33   : > { %p1755_p9 = pnand %p1754_p7, %p1748_p2 }
  0x35   : > { %1758 = shalt.err (!%p1755_p9)
}
  0x36   : > { %s2124_s29 = smov 64   ;;  %s2125_s30 = smov 4  }
  0x37   : > { %1596 = dma.hbm_to_vmem [thread:$0]  (!%p2240_p6), %s2748_s3, 1024, %s2233_s22, [#allocation9], %s2124_s29, %s2124_s29, %s2125_s30  }
  0x38   : > { %s2750_s5 = sld [smem:[#allocation34_spill]] }
  0x3e   : > { %s1759_s28 = scalar_lea.hbm %s2750_s5, 1024 }
  0x3f   : > { %p1760_p5 = scmp.ne.s32.totalorder %s2750_s5, %s1759_s28  ;;  %p1766_p12 = scmp.lt.u32.totalorder %s1759_s28, %s2750_s5 }
  0x41   : > { %p1762_p10 = pnand %p1760_p5, %p2256_p8 }
  0x43   : > { %p1763_p11 = pneg %p1762_p10 }
  0x45   : > { %p1768_p13 = pnand %p1766_p12, %p1763_p11 }
  0x47   : > { %1771 = shalt.err (!%p1768_p13)
}
  0x48   : > { %s1772_s22 = scalar_lea.vmem %s2244_s25, 1024  ;;  %p1780_p7 = scmp.lt.s32.totalorder %s2244_s25, %s2244_s25 }
  0x49   : > { %p1773_p0 = scmp.ne.s32.totalorder %s2244_s25, %s1772_s22  ;;  %p1781_p9 = scmp.lt.s32.totalorder %s1772_s22, %s1772_s22 }
  0x4b   : > { %p1775_p2 = pnand %p1773_p0, %p2256_p8  ;;  %p1782_p5 = por %p1781_p9, %p1780_p7 }
  0x4d   : > { %p1776_p4 = pneg %p1775_p2 }
  0x4f   : > { %p1783_p10 = pnand %p1782_p5, %p1776_p4 }
  0x51   : > { %1786 = shalt.err (!%p1783_p10)
}
  0x52   : > { %1602 = dma.hbm_to_vmem [thread:$0]  (!%p2240_p6), %s2750_s5, 1024, %s2244_s25, [#allocation12], %s2124_s29, %s2124_s29, %s2125_s30  }
  0x53   : > { %s2751_s7 = sld [smem:[#allocation35_spill]] }
  0x59   : > { %s1787_s11 = scalar_lea.hbm %s2751_s7, 1024 }
  0x5a   : > { %p1788_p11 = scmp.ne.s32.totalorder %s2751_s7, %s1787_s11  ;;  %p1794_p0 = scmp.lt.u32.totalorder %s1787_s11, %s2751_s7 }
  0x5c   : > { %p1790_p12 = pnand %p1788_p11, %p2256_p8 }
  0x5e   : > { %p1791_p13 = pneg %p1790_p12 }
  0x60   : > { %p1796_p2 = pnand %p1794_p0, %p1791_p13 }
  0x62   : > { %1799 = shalt.err (!%p1796_p2)
}
  0x63   : > { %s1800_s22 = scalar_lea.vmem %s378_s27, 1024  ;;  %p1808_p5 = scmp.lt.s32.totalorder %s378_s27, %s378_s27 }
  0x64   : > { %p1801_p4 = scmp.ne.s32.totalorder %s378_s27, %s1800_s22  ;;  %p1809_p10 = scmp.lt.s32.totalorder %s1800_s22, %s1800_s22 }
  0x66   : > { %p1803_p7 = pnand %p1801_p4, %p2256_p8  ;;  %p1810_p1 = por %p1809_p10, %p1808_p5 }
  0x68   : > { %p1804_p9 = pneg %p1803_p7 }
  0x6a   : > { %p1811_p3 = pnand %p1810_p1, %p1804_p9 }
  0x6c   : > { %1814 = shalt.err (!%p1811_p3)
}
  0x6d   : > { %1608 = dma.hbm_to_vmem [thread:$0]  (!%p2240_p6), %s2751_s7, 1024, %s378_s27, [#allocation15], %s2124_s29, %s2124_s29, %s2125_s30  }
  0x6e   : > { %s1333_s10 = sadd.s32 4294967294, %s2119_s18   ;;  %s48_s16 = sadd.s32 1, %s2115_s17 }
  0x6f   : > { %s55_s20 = sadd.s32 1, %s2107_s15  ;;  %p50_p1 = scmp.ge.s32.totalorder %s48_s16, 2 }
  0x70   : > { %p62_p3 = scmp.ne.s32.totalorder %s2107_s15, %s2103_s14  ;;  %p63_p11 = scmp.eq.s32.totalorder %s2119_s18, 0 }
  0x71   : > { %p68_p12 = scmp.ne.s32.totalorder %s2103_s14, %s2099_s13  ;;  %s2789_s16 = smov (%p50_p1, %s48_s16), 0 }
  0x72   : > { %2752 = sst [smem:[#allocation30_spill]] %s2789_s16  ;;  %p64_p13 = por %p63_p11, %p62_p3 }
  0x73   : > { %p2753_p0 = scmp.eq.s32.totalorder %s2224_s19, 0  ;;  %s52_s27 = ssub.s32 %s2115_s17, %s2789_s16 }
  0x74   : > { %p276_p4 = scmp.eq.s32.totalorder %s2224_s19, 1  ;;  %p53_p7 = scmp.eq.s32.totalorder %s52_s27, 0 }
  0x75   : > { %p2340_p2 = por %p2753_p0, %p68_p12  ;;  %p282_p9 = scmp.eq.s32.totalorder %s1333_s10, 1 }
  0x76   : > { %p2347_p5 = por %p276_p4, %p62_p3  ;;  %p1635_p10 = scmp.lt.s32.totalorder %s2119_s18, 2 }
  0x77   : > { %s2754_s11 = scalar_select %p2340_p2, 1, 0 }
  0x78   : > { %s2755_s29 = scalar_select %p2347_p5, 1, 0 }
  0x79   : > { %s2353_s30 = scalar_select %p53_p7, %s2107_s15, %s55_s20  }
  0x7a   : > { %p2355_p1 = por %p282_p9, %p68_p12  ;;  %s2360_s24 = sand.u32 1, %s2107_s15  }
  0x7b   : > { %2756 = sst [smem:[#allocation31_spill]] %s2353_s30  ;;  %p2362_p11 = pnand %p1635_p10, %p64_p13 }
  0x7c   : > { %s2757_s12 = scalar_select %p2355_p1, 1, 0 }
  0x7d   : > { %s2758_s26 = scalar_select %p2362_p11, 1, 0 }
  0x7e   : > { %s423_s28 = sand.u32 1, %s2119_s18   ;;  %s1345_s22 = sshll.u32 %s2360_s24, 3 }
  0x7f   : > { %s1346_s25 = sshll.u32 %s2115_s17, 7  ;;  %s427_s9 = scalar_lea.vmem [#allocation5], %s1345_s22 }
  0x80   : > { %s435_s10 = sshll.u32 %s427_s9, 4  ;;  %s2759_s1 = sld [smem:[#allocation32_spill]]  ;;  %s2374_s10 = int_to_ptr.vmem [resolvable:$true] %s435_s10 }
  0x81   : > { %s2376_s5 = scalar_lea.sflag [#allocation6], %s423_s28  ;;  %p2382_p12 = pneg %p2362_p11 }
  0x83   : > { %s2760_s16 = scalar_select %p2382_p12, 1, 0 }
  0x86   : > { %s2372_s3 = scalar_lea.hbm %s2759_s1, %s1346_s25  ;;  %s1820_s9 = scalar_lea.hbm %s2759_s1, 256 }
  0x87   : > { %s1815_s7 = scalar_lea.hbm %s2372_s3, 128  ;;  %p1821_p4 = scmp.lt.u32.totalorder %s2372_s3, %s2759_s1 }
  0x88   : > { %p1816_p3 = scmp.ne.s32.totalorder %s2372_s3, %s1815_s7  ;;  %p1822_p7 = scmp.lt.u32.totalorder %s1820_s9, %s1815_s7 }
  0x89   : > { %p1824_p10 = scmp.lt.u32.totalorder %s1815_s7, %s2372_s3 }
  0x8a   : > { %p1818_p13 = pnand %p2382_p12, %p1816_p3  ;;  %p1823_p9 = por %p1822_p7, %p1821_p4 }
  0x8c   : > { %p1819_p0 = pneg %p1818_p13  ;;  %p1825_p1 = por %p1824_p10, %p1823_p9 }
  0x8e   : > { %p1826_p5 = pnand %p1825_p1, %p1819_p0 }
  0x90   : > { %1829 = shalt.err (!%p1826_p5)
}
  0x91   : > { %s1830_s28 = scalar_lea.vmem %s2374_s10, 128  ;;  %s2126_s22 = smov [#allocation5]  }
  0x92   : > { %p1831_p3 = scmp.ne.s32.totalorder %s2374_s10, %s1830_s28  ;;  %s1835_s25 = sshll.u32 %s2126_s22, 4  ;;  %s1836_s25 = int_to_ptr.vmem [resolvable:$false] %s1835_s25 }
  0x93   : > { %s1837_s27 = scalar_lea.vmem %s1836_s25, 256  ;;  %p1838_p6 = scmp.lt.s32.totalorder %s2374_s10, %s1836_s25 }
  0x94   : > { %p1833_p13 = pnand %p1831_p3, %p2382_p12  ;;  %p1839_p8 = scmp.lt.s32.totalorder %s1837_s27, %s1830_s28 }
  0x96   : > { %p1834_p2 = pneg %p1833_p13  ;;  %p1840_p4 = por %p1839_p8, %p1838_p6 }
  0x98   : > { %p1841_p7 = pnand %p1840_p4, %p1834_p2 }
  0x9a   : > { %1844 = shalt.err (!%p1841_p7)
}
  0x9b   : > { %1618 = dma.hbm_to_vmem [thread:$0]  (!%p2362_p11), %s2372_s3, 128, %s2374_s10, %s2376_s5  }
  0x9c   : > { %s2127_s7 = smov [#allocation10]   ;;  %s2128_s20 = smov [#allocation13]  }
  0x9d   : > { %s343_s9 = sshll.u32 %s2127_s7, 4  ;;  %s367_s1 = sshll.u32 %s2128_s20, 4  ;;  %s344_s9 = int_to_ptr.vmem [resolvable:$true] %s343_s9  ;;  %s2406_s1 = int_to_ptr.vmem [resolvable:$true] %s367_s1 }
  0x9e   : > { %s1845_s28 = scalar_lea.hbm %s2712_s4, 16  ;;  %p2761_p8 = scmp.ne.s32.totalorder %s2749_s21, 0 }
  0x9f   : > { %p1846_p6 = scmp.ne.s32.totalorder %s2712_s4, %s1845_s28  ;;  %p1852_p1 = scmp.lt.u32.totalorder %s1845_s28, %s2712_s4 }
  0xa1   : > { %p1848_p2 = pnand %p1846_p6, %p2761_p8 }
  0xa3   : > { %p1849_p5 = pneg %p1848_p2 }
  0xa5   : > { %p1854_p0 = pnand %p1852_p1, %p1849_p5 }
  0xa7   : > { %1857 = shalt.err (!%p1854_p0)
}
  0xa8   : > { %s1858_s10 = scalar_lea.vmem %s344_s9, 16  ;;  %s1865_s7 = scalar_lea.vmem %s344_s9, 32 }
  0xa9   : > { %p1859_p9 = scmp.ne.s32.totalorder %s344_s9, %s1858_s10  ;;  %p1866_p13 = scmp.lt.s32.totalorder %s344_s9, %s344_s9 }
  0xaa   : > { %p1867_p4 = scmp.lt.s32.totalorder %s1865_s7, %s1858_s10 }
  0xab   : > { %p1861_p10 = pnand %p1859_p9, %p2761_p8 }
  0xac   : > { %p1868_p7 = por %p1867_p4, %p1866_p13 }
  0xad   : > { %p1862_p3 = pneg %p1861_p10 }
  0xaf   : > { %p1869_p11 = pnand %p1868_p7, %p1862_p3 }
  0xb1   : > { %1872 = shalt.err (!%p1869_p11)
}
  0xb2   : > { %p2762_p6 = scmp.ne.s32.totalorder %s2747_s23, 0  ;;  %s1873_s25 = scalar_lea.hbm %s2714_s6, 16 }
  0xb3   : > { %p1874_p2 = scmp.ne.s32.totalorder %s2714_s6, %s1873_s25  ;;  %p1880_p11 = scmp.lt.u32.totalorder %s1873_s25, %s2714_s6 }
  0xb4   : > { %1599 = dma.hbm_to_vmem [thread:$0]  (!%p2762_p6), %s2712_s4, 16, %s344_s9, [#allocation9]  }
  0xb5   : > { %p1876_p5 = pnand %p1874_p2, %p2761_p8 }
  0xb7   : > { %p1877_p1 = pneg %p1876_p5 }
  0xb9   : > { %p1882_p0 = pnand %p1880_p11, %p1877_p1 }
  0xbb   : > { %1885 = shalt.err (!%p1882_p0)
}
  0xbc   : > { %s1886_s9 = scalar_lea.vmem %s2406_s1, 16  ;;  %s1893_s7 = scalar_lea.vmem %s2406_s1, 32 }
  0xbd   : > { %p1887_p9 = scmp.ne.s32.totalorder %s2406_s1, %s1886_s9  ;;  %p1894_p13 = scmp.lt.s32.totalorder %s2406_s1, %s2406_s1 }
  0xbe   : > { %p1895_p4 = scmp.lt.s32.totalorder %s1893_s7, %s1886_s9 }
  0xbf   : > { %p1889_p10 = pnand %p1887_p9, %p2761_p8 }
  0xc0   : > { %p1896_p7 = por %p1895_p4, %p1894_p13 }
  0xc1   : > { %p1890_p3 = pneg %p1889_p10 }
  0xc3   : > { %p1897_p2 = pnand %p1896_p7, %p1890_p3 }
  0xc5   : > { %1900 = shalt.err (!%p1897_p2)
}
  0xc6   : > { %1605 = dma.hbm_to_vmem [thread:$0]  (!%p2762_p6), %s2714_s6, 16, %s2406_s1, [#allocation12]  }
  0xc7   : > { %s2129_s15 = smov [#allocation16]   ;;  %s1342_s25 = sshll.u32 %s2360_s24, 7 }
  0xc8   : > { %s391_s22 = sshll.u32 %s2129_s15, 4  ;;  %s1901_s3 = scalar_lea.hbm %s2716_s8, 16  ;;  %s392_s22 = int_to_ptr.vmem [resolvable:$true] %s391_s22 }
  0xc9   : > { %p1902_p5 = scmp.ne.s32.totalorder %s2716_s8, %s1901_s3  ;;  %p1908_p0 = scmp.lt.u32.totalorder %s1901_s3, %s2716_s8 }
  0xcb   : > { %p1904_p1 = pnand %p1902_p5, %p2761_p8 }
  0xcd   : > { %p1905_p11 = pneg %p1904_p1 }
  0xcf   : > { %p1910_p9 = pnand %p1908_p0, %p1905_p11 }
  0xd1   : > { %1913 = shalt.err (!%p1910_p9)
}
  0xd2   : > { %s1914_s1 = scalar_lea.vmem %s392_s22, 16  ;;  %s1921_s20 = scalar_lea.vmem %s392_s22, 32 }
  0xd3   : > { %p1915_p10 = scmp.ne.s32.totalorder %s392_s22, %s1914_s1  ;;  %p1922_p4 = scmp.lt.s32.totalorder %s392_s22, %s392_s22 }
  0xd4   : > { %p1923_p7 = scmp.lt.s32.totalorder %s1921_s20, %s1914_s1 }
  0xd5   : > { %p1917_p3 = pnand %p1915_p10, %p2761_p8 }
  0xd6   : > { %p1924_p2 = por %p1923_p7, %p1922_p4 }
  0xd7   : > { %p1918_p13 = pneg %p1917_p3 }
  0xd9   : > { %p1925_p12 = pnand %p1924_p2, %p1918_p13 }
  0xdb   : > { %1928 = shalt.err (!%p1925_p12)
}
  0xdc   : > { %1611 = dma.hbm_to_vmem [thread:$0]  (!%p2762_p6), %s2716_s8, 16, %s392_s22, [#allocation15]  }
  0xdd   : > { %s1394_s27 = sshll.u32 %s2115_s17, 11  ;;  %s406_s3 = scalar_lea.vmem [#allocation2], %s1342_s25 }
  0xde   : > { %s413_s21 = sshll.u32 %s406_s3, 4  ;;  %s2473_s7 = scalar_lea.hbm %s2708_s0, %s1394_s27  ;;  %s2475_s21 = int_to_ptr.vmem [resolvable:$true] %s413_s21 }
  0xdf   : > { %s403_s23 = scalar_lea.sflag [#allocation3], %s2360_s24  ;;  %s1929_s30 = scalar_lea.hbm %s2473_s7, 2048 }
  0xe0   : > { %p1930_p12 = scmp.ne.s32.totalorder %s2473_s7, %s1929_s30  ;;  %p2763_p8 = scmp.ne.s32.totalorder %s2760_s16, 0 }
  0xe1   : > { %s1934_s1 = scalar_lea.hbm %s2708_s0, 4096  ;;  %p1935_p1 = scmp.lt.u32.totalorder %s2473_s7, %s2708_s0 }
  0xe2   : > { %p1932_p5 = pnand %p1930_p12, %p2763_p8  ;;  %p1936_p11 = scmp.lt.u32.totalorder %s1934_s1, %s1929_s30 }
  0xe3   : > { %p1938_p9 = scmp.lt.u32.totalorder %s1929_s30, %s2473_s7 }
  0xe4   : > { %p1933_p6 = pneg %p1932_p5  ;;  %p1937_p0 = por %p1936_p11, %p1935_p1 }
  0xe6   : > { %p1939_p10 = por %p1938_p9, %p1937_p0 }
  0xe8   : > { %p1940_p3 = pnand %p1939_p10, %p1933_p6 }
  0xea   : > { %1943 = shalt.err (!%p1940_p3)
}
  0xeb   : > { %s1944_s28 = scalar_lea.vmem %s2475_s21, 2048  ;;  %s2130_s27 = smov [#allocation2]  }
  0xec   : > { %p1945_p13 = scmp.ne.s32.totalorder %s2475_s21, %s1944_s28  ;;  %s1949_s3 = sshll.u32 %s2130_s27, 4  ;;  %s1950_s3 = int_to_ptr.vmem [resolvable:$false] %s1949_s3 }
  0xed   : > { %s1951_s10 = scalar_lea.vmem %s1950_s3, 4096  ;;  %p1952_p2 = scmp.lt.s32.totalorder %s2475_s21, %s1950_s3 }
  0xee   : > { %p1947_p4 = pnand %p1945_p13, %p2763_p8  ;;  %p1953_p12 = scmp.lt.s32.totalorder %s1951_s10, %s1944_s28 }
  0xf0   : > { %p1948_p7 = pneg %p1947_p4  ;;  %p1954_p5 = por %p1953_p12, %p1952_p2 }
  0xf2   : > { %p1955_p1 = pnand %p1954_p5, %p1948_p7 }
  0xf4   : > { %1958 = shalt.err (!%p1955_p1)
}
  0xf5   : > { %s2131_s9 = smov 128   ;;  %s2132_s30 = smov 8  }
  0xf6   : > { %p2764_p6 = scmp.ne.s32.totalorder %s2758_s26, 0  ;;  %s1347_s22 = sshll.u32 %s2360_s24, 2 }
  0xf7   : > { %s1348_s25 = sshll.u32 %s2115_s17, 6  ;;  %s446_s28 = scalar_lea.vmem [#allocation7], %s1347_s22 }
  0xf8   : > { %1615 = dma.hbm_to_vmem [thread:$0]  (!%p2764_p6), %s2473_s7, 2048, %s2475_s21, %s403_s23, %s2131_s9, %s2131_s9, %s2132_s30  }
  0xf9   : > { %s2506_s15 = scalar_lea.hbm %s2710_s2, %s1348_s25  ;;  %s454_s27 = sshll.u32 %s446_s28, 4  ;;  %s455_s27 = int_to_ptr.vmem [resolvable:$true] %s454_s27 }
  0xfa   : > { %s1959_s3 = scalar_lea.hbm %s2506_s15, 64  ;;  %s1964_s7 = scalar_lea.hbm %s2710_s2, 128 }
  0xfb   : > { %p1960_p11 = scmp.ne.s32.totalorder %s2506_s15, %s1959_s3  ;;  %p1965_p10 = scmp.lt.u32.totalorder %s2506_s15, %s2710_s2 }
  0xfc   : > { %p1966_p3 = scmp.lt.u32.totalorder %s1964_s7, %s1959_s3  ;;  %p1968_p4 = scmp.lt.u32.totalorder %s1959_s3, %s2506_s15 }
  0xfd   : > { %p1962_p0 = pnand %p1960_p11, %p2763_p8 }
  0xfe   : > { %p1967_p13 = por %p1966_p3, %p1965_p10 }
  0xff   : > { %p1963_p9 = pneg %p1962_p0 }
 0x100   : > { %p1969_p7 = por %p1968_p4, %p1967_p13 }
 0x102   : > { %p1970_p2 = pnand %p1969_p7, %p1963_p9 }
 0x104   : > { %1973 = shalt.err (!%p1970_p2)
}
 0x105   : > { %s1974_s9 = scalar_lea.vmem %s455_s27, 64  ;;  %s2133_s30 = smov [#allocation7]  }
 0x106   : > { %p1975_p12 = scmp.ne.s32.totalorder %s455_s27, %s1974_s9  ;;  %s1979_s22 = sshll.u32 %s2133_s30, 4  ;;  %s1980_s22 = int_to_ptr.vmem [resolvable:$false] %s1979_s22 }
 0x107   : > { %s1981_s25 = scalar_lea.vmem %s1980_s22, 128  ;;  %p1982_p11 = scmp.lt.s32.totalorder %s455_s27, %s1980_s22 }
 0x108   : > { %p1977_p5 = pnand %p1975_p12, %p2763_p8  ;;  %p1983_p0 = scmp.lt.s32.totalorder %s1981_s25, %s1974_s9 }
 0x10a   : > { %p1978_p1 = pneg %p1977_p5  ;;  %p1984_p6 = por %p1983_p0, %p1982_p11 }
 0x10c   : > { %p1985_p3 = pnand %p1984_p6, %p1978_p1 }
 0x10e   : > { %1988 = shalt.err (!%p1985_p3)
}
 0x10f   : > { %p2765_p10 = scmp.ne.s32.totalorder %s2758_s26, 0  ;;  %s2766_s1 = sld [smem:[#allocation29_spill]] }
 0x111   : > { %1621 = dma.hbm_to_vmem [thread:$0]  (!%p2765_p10), %s2506_s15, 64, %s455_s27, %s2376_s5  }
 0x115   : > { %p2767_p9 = scmp.ne.s32.totalorder %s2766_s1, 0 }
 0x116   : > { %s2529_s16 = sand.u32 (!%p2767_p9), 1, %s2103_s14   ;;  %p2768_p8 = scmp.ne.s32.totalorder (!%p2767_p9), %s2754_s11, 0 }
 0x117   : > { %463 = sbr.rel (%p2767_p9) target bundleno = 1585 (0x631), region = 56  ;;  %s1350_s20 = sshll.u32 (!%p2767_p9), %s2529_s16, 7 }
 0x118   : > { %s466_s28 = scalar_lea.sflag (!%p2767_p9), [#allocation3], %s2529_s16  ;;  %s2533_s3 = scalar_lea.vmem (!%p2767_p9), [#allocation2], %s1350_s20 }
 0x11e   : > { %2070 = dma.done.wait (%p2768_p8), %s466_s28, 2048  }
 0x11f   : > { %2072 = vsyncadd (%p2768_p8), %s466_s28, 4294965248  ;;  %s474_s5 = sand.u32 1, %s2224_s19   ;;  %s2541_s26 = sshll.u32 %s2529_s16, 3 }
 0x120   : > { %s475_s15 = scalar_lea.sflag [#allocation6], %s474_s5  ;;  %s478_s27 = scalar_lea.vmem [#allocation5], %s2541_s26 }
 0x121   : > { %2074 = dma.done.wait (%p2768_p8), %s475_s15, 192  }
 0x122   : > { %2076 = vsyncadd (%p2768_p8), %s475_s15, 4294967104  ;;  %s1352_s21 = sshll.u32 %s2529_s16, 2  ;;  %p2769_p6 = scmp.eq.s32.totalorder %s2224_s19, 0 }
 0x123   : > { %s2549_s24 = scalar_lea.vmem [#allocation7], %s1352_s21 }
 0x124   : > { %2078 = dma.done.wait (%p2769_p6), [#allocation9], 1040   ;;  %p2770_p13 = pmov %p2769_p6 }
 0x125   : > { %p2771_p4 = pmov %p2769_p6 }
 0x126   : > { %2080 = vsyncadd (%p2770_p13), [#allocation9], 4294966256 }
 0x127   : > { %2082 = dma.done.wait (%p2771_p4), [#allocation12], 1040   ;;  %p2772_p7 = pmov %p2771_p4 }
 0x128   : > { %p2773_p2 = pmov %p2771_p4 }
 0x129   : > { %2084 = vsyncadd (%p2772_p7), [#allocation12], 4294966256 }
 0x12a   : > { %2086 = dma.done.wait (%p2773_p2), [#allocation15], 1040   ;;  %p2774_p12 = pmov %p2773_p2 }
 0x12b   : > { %v2134_v0 = vmov 0.0   ;;  %vm2135_vm0 = vmmov 0   ;;  %v1703_v1 = vld [vmem:[#allocation11] sm:$0xff]   ;;  %v1704_v2 = vld [vmem:[#allocation11 + $0x8] sm:$0xff]   ;;  %v1705_v3 = vld [vmem:[#allocation11 + $0x10] sm:$0xff]   ;;  %s562_s19 = scalar_lea.vmem [#allocation18], %s2541_s26 }
 0x12c   : > { %2088 = vsyncadd (%p2774_p12), [#allocation15], 4294966256  ;;  %1447 = vmatprep.subr.bf16.mxu0 %v2134_v0  ;;  %1463 = vmatprep.mubr.msk.bf16.mxu0 %vm2135_vm0, %v2134_v0  ;;  %v1706_v4 = vld [vmem:[#allocation11 + $0x18] sm:$0xff]   ;;  %v564_v5 = vld [vmem:[%s2533_s3] sm:$0xff]  ;;  %s2775_s11 = sld [smem:[#allocation28_spill]]  ;;  %s2776_s9 = sld [smem:[#allocation37_spill]] }
 0x12d   : > { %1467 = vmatprep.subr.bf16.mxu1 %v1703_v1  ;;  %v565_v6 = vld [vmem:[%s2533_s3 + $0x8] sm:$0xff]  ;;  %v1707_v8 = vld [vmem:[#allocation11 + $0x20] sm:$0xff]   ;;  %v1714_v14 = vld [vmem:[#allocation8 + $0x18] sm:$0xff]   ;;  %s1118_s22 = sshll.u32 %s562_s19, 4  ;;  %s1090_s25 = scalar_lea.sflag [#allocation19], %s2529_s16  ;;  %s1119_s22 = int_to_ptr.vmem [resolvable:$true] %s1118_s22 }
 0x12e   : > { %1468 = vmatpush3.bf16.msra.mxu1 %v1703_v1  ;;  %v580_v7 = vpack.c.bf16 %v565_v6, %v564_v5  ;;  %v1711_v9 = vld [vmem:[#allocation8] sm:$0xff]   ;;  %v1712_v10 = vld [vmem:[#allocation8 + $0x8] sm:$0xff]   ;;  %v1713_v12 = vld [vmem:[#allocation8 + $0x10] sm:$0xff]   ;;  %s1989_s1 = scalar_lea.vmem %s1119_s22, 128  ;;  %p2777_p1 = scmp.ne.s32.totalorder %s2755_s29, 0 }
 0x12f   : > { %1469 = vmatprep.subr.bf16.mxu1 %v1704_v2  ;;  %1448 = vmatpush3.bf16.msra.mxu0 %v1711_v9  ;;  %v1708_v11 = vld [vmem:[#allocation11 + $0x28] sm:$0xff]   ;;  %v1709_v13 = vld [vmem:[#allocation11 + $0x30] sm:$0xff]   ;;  %v1710_v15 = vld [vmem:[#allocation11 + $0x38] sm:$0xff]   ;;  %p1990_p5 = scmp.ne.s32.totalorder %s1119_s22, %s1989_s1  ;;  %s2136_s20 = smov [#allocation18]  }
 0x130   : > { %1483 = vmatprep.mubr.bf16.mxu1 %v580_v7  ;;  %1449 = vmatprep.subr.bf16.mxu0 %v2134_v0  ;;  %v1715_v16 = vld [vmem:[#allocation8 + $0x20] sm:$0xff]   ;;  %v566_v17 = vld [vmem:[%s2533_s3 + $0x10] sm:$0xff]  ;;  %v568_v19 = vld [vmem:[%s2533_s3 + $0x20] sm:$0xff]  ;;  %s1993_s28 = sshll.u32 %s2136_s20, 4  ;;  %s1994_s28 = int_to_ptr.vmem [resolvable:$false] %s1993_s28 }
 0x131   : > { %v567_v18 = vld [vmem:[%s2533_s3 + $0x18] sm:$0xff]  ;;  %v569_v20 = vld [vmem:[%s2533_s3 + $0x28] sm:$0xff]  ;;  %v1716_v22 = vld [vmem:[#allocation8 + $0x28] sm:$0xff]   ;;  %p1991_p11 = pnand %p1990_p5, %p2777_p1  ;;  %p1996_p3 = scmp.lt.s32.totalorder %s1119_s22, %s1994_s28 }
 0x132   : > { %1470 = vmatpush3.bf16.msra.mxu1 %v1704_v2  ;;  %v581_v21 = vpack.c.bf16 %v567_v18, %v566_v17  ;;  %v582_v23 = vpack.c.bf16 %v569_v20, %v568_v19  ;;  %v1717_v24 = vld [vmem:[#allocation8 + $0x30] sm:$0xff]   ;;  %v570_v25 = vld [vmem:[%s2533_s3 + $0x30] sm:$0xff]  ;;  %v571_v26 = vld [vmem:[%s2533_s3 + $0x38] sm:$0xff]  ;;  %s1390_s7 = sshll.u32 %s2775_s11, 7 }
 0x133   : > { %1471 = vmatprep.subr.bf16.mxu1 %v1705_v3  ;;  %1450 = vmatpush3.bf16.msra.mxu0 %v1712_v10  ;;  %v572_v27 = vld [vmem:[%s2533_s3 + $0x40] sm:$0xff]  ;;  %v573_v28 = vld [vmem:[%s2533_s3 + $0x48] sm:$0xff]  ;;  %v583_v29 = vpack.c.bf16 %v571_v26, %v570_v25  ;;  %v1718_v30 = vld [vmem:[#allocation8 + $0x38] sm:$0xff]   ;;  %s2631_s30 = scalar_lea.hbm %s2776_s9, %s1390_s7  ;;  %p1992_p0 = pneg %p1991_p11 }
 0x134   : > { %1451 = vmatprep.subr.bf16.mxu0 %v2134_v0  ;;  %v588_v31 = vld [vmem:[%s478_s27] sm:$0xff]  ;;  %v584_v32 = vpack.c.bf16 %v573_v28, %v572_v27  ;;  %v574_v34 = vld [vmem:[%s2533_s3 + $0x50] sm:$0xff]  ;;  %v575_v35 = vld [vmem:[%s2533_s3 + $0x58] sm:$0xff] }
 0x135   : > { %v589_v33 = vpack.c.bf16 %v588_v31, %v588_v31  ;;  %v576_v36 = vld [vmem:[%s2533_s3 + $0x60] sm:$0xff]  ;;  %v577_v37 = vld [vmem:[%s2533_s3 + $0x68] sm:$0xff]  ;;  %v585_v38 = vpack.c.bf16 %v575_v35, %v574_v34  ;;  %v578_v40 = vld [vmem:[%s2533_s3 + $0x70] sm:$0xff] }
 0x136   : > { %1472 = vmatpush3.bf16.msra.mxu1 %v1705_v3  ;;  %v586_v39 = vpack.c.bf16 %v577_v37, %v576_v36  ;;  %v579_v41 = vld [vmem:[%s2533_s3 + $0x78] sm:$0xff]  ;;  %v878_v28 = vld [vmem:[%s2549_s24] sm:$0xf]  ;;  %s1995_s3 = scalar_lea.vmem %s1994_s28, 256 }
 0x137   : > { %1473 = vmatprep.subr.bf16.mxu1 %v1706_v4  ;;  %1452 = vmatpush3.bf16.msra.mxu0 %v1713_v12  ;;  %v587_v42 = vpack.c.bf16 %v579_v41, %v578_v40  ;;  %v1370_v44 = vld [vmem:[#allocation13] ss:$0 sm:$0xff]  ;;  %v1361_v25 = vld [vmem:[#allocation10] ss:$0 sm:$0xff]  ;;  %p1997_p10 = scmp.lt.s32.totalorder %s1995_s3, %s1989_s1 }
 0x138   : > { %1453 = vmatprep.subr.bf16.mxu0 %v2134_v0 }
 0x139   : > { %p1998_p9 = por %p1997_p10, %p1996_p3 }
 0x13a   : > { %1474 = vmatpush3.bf16.msra.mxu1 %v1706_v4 }
 0x13b   : > { %1475 = vmatprep.subr.bf16.mxu1 %v1707_v8  ;;  %1454 = vmatpush3.bf16.msra.mxu0 %v1714_v14  ;;  %p1999_p8 = pnand %p1998_p9, %p1992_p0 }
 0x13c   : > { %1455 = vmatprep.subr.bf16.mxu0 %v2134_v0 }
 0x13e   : > { %1476 = vmatpush3.bf16.msra.mxu1 %v1707_v8 }
 0x13f   : > { %1477 = vmatprep.subr.bf16.mxu1 %v1708_v11  ;;  %1456 = vmatpush3.bf16.msra.mxu0 %v1715_v16 }
 0x140   : > { %1457 = vmatprep.subr.bf16.mxu0 %v2134_v0 }
 0x142   : > { %1478 = vmatpush3.bf16.msra.mxu1 %v1708_v11 }
 0x143   : > { %1479 = vmatprep.subr.bf16.mxu1 %v1709_v13  ;;  %1458 = vmatpush3.bf16.msra.mxu0 %v1716_v22 }
 0x144   : > { %1459 = vmatprep.subr.bf16.mxu0 %v2134_v0 }
 0x146   : > { %1480 = vmatpush3.bf16.msra.mxu1 %v1709_v13 }
 0x147   : > { %1481 = vmatprep.subr.bf16.mxu1 %v1710_v15  ;;  %1460 = vmatpush3.bf16.msra.mxu0 %v1717_v24 }
 0x148   : > { %1461 = vmatprep.subr.bf16.mxu0 %v2134_v0 }
 0x14a   : > { %1482 = vmatpush3.bf16.msra.mxu1 %v1710_v15 }
 0x14b   : > { %1519 = vmatprep.subr.bf16.mxu1 %v2134_v0  ;;  %1462 = vmatpush3.bf16.msra.mxu0 %v1718_v30 }
 0x14c   : > { %1499 = vmatprep.subr.bf16.mxu0 %v2134_v0 }
 0x14d   : > { %1484 = vmatmul.mubr.bf16.vlgmr.msra.gmra.mrb[0].mxu1 %v581_v21 }
 0x14e   : > { %1487 = vmatprep.mubr.bf16.mxu1 %v582_v23  ;;  %1520 = vmatpush3.bf16.msra.mxu1 %v580_v7 }
 0x14f   : > { %1521 = vmatprep.subr.bf16.mxu1 %v2134_v0  ;;  %1464 = vmatmul.mubr.bf16.vlgmr.msra.gmra.mrb[0].mxu0 %v589_v33 }
 0x150   : > { %1515 = vmatprep.mubr.msk.bf16.mxu0 %vm2135_vm0, %v2134_v0 }
 0x152   : > { %1522 = vmatpush3.bf16.msra.mxu1 %v581_v21 }
 0x153   : > { %1523 = vmatprep.subr.bf16.mxu1 %v2134_v0 }
 0x155   : > { %1488 = vmatmul.mubr.bf16.gmra.mrb[4].mxu1 %v583_v29 }
 0x156   : > { %1491 = vmatprep.mubr.bf16.mxu1 %v584_v32  ;;  %1524 = vmatpush3.bf16.msra.mxu1 %v582_v23 }
 0x157   : > { %1525 = vmatprep.subr.bf16.mxu1 %v2134_v0 }
 0x15a   : > { %1526 = vmatpush3.bf16.msra.mxu1 %v583_v29  ;;  %v879_v29 = vunpack.c.l.bf16 %v878_v28 }
 0x15b   : > { %1527 = vmatprep.subr.bf16.mxu1 %v2134_v0 }
 0x15d   : > { %1492 = vmatmul.mubr.bf16.gmra.mrb[8].mxu1 %v585_v38 }
 0x15e   : > { %1495 = vmatprep.mubr.bf16.mxu1 %v586_v39  ;;  %1528 = vmatpush3.bf16.msra.mxu1 %v584_v32 }
 0x15f   : > { %1529 = vmatprep.subr.bf16.mxu1 %v2134_v0 }
 0x162   : > { %1530 = vmatpush3.bf16.msra.mxu1 %v585_v38 }
 0x163   : > { %1531 = vmatprep.subr.bf16.mxu1 %v2134_v0 }
 0x165   : > { %1496 = vmatmul.mubr.bf16.gmra.mrb[12].mxu1 %v587_v42 }
 0x166   : > { %1535 = vmatprep.mubr.msk.bf16.mxu1 %vm2135_vm0, %v2134_v0  ;;  %1532 = vmatpush3.bf16.msra.mxu1 %v586_v39 }
 0x167   : > { %1533 = vmatprep.subr.bf16.mxu1 %v2134_v0 }
 0x16a   : > { %1534 = vmatpush3.bf16.msra.mxu1 %v587_v42  ;;  %v1719_v42 = vld [vmem:[#allocation14] sm:$0xff]  }
 0x16b   : > { %1539 = vmatprep.subr.bf16.mxu1 %v2134_v0 }
 0x220   : > { %v1485_v43 = vpop.f32.mrb[0].mxu1 }
 0x221   : > { %v806_v45 = vpop.f32.mrb[1].mxu1  ;;  %v815_v47 = vadd.f32 %v1485_v43, %v1370_v44 }
 0x222   : > { %v1486_v46 = vpop.f32.mrb[2].mxu1  ;;  %v807_v50 = vadd.f32 %v1370_v44, %v806_v45  ;;  %v695_v61 = vpop.f32.mrb[0].mxu0  ;;  %v1721_v45 = vld [vmem:[#allocation14 + $0x10] sm:$0xff]  }
 0x223   : > { %v818_v48 = vadd.f32 %v1486_v46, %v1370_v44  ;;  %v809_v49 = vpop.f32.mrb[3].mxu1  ;;  %v1465_v63 = vpop.f32.mrb[1].mxu0  ;;  %v696_v26 = vadd.f32 %v1361_v25, %v695_v61  ;;  %v1722_v46 = vld [vmem:[#allocation14 + $0x18] sm:$0xff]  }
 0x224   : > { %v810_v51 = vadd.f32 %v1370_v44, %v809_v49  ;;  %v698_v2 = vpop.f32.mrb[2].mxu0  ;;  %v1725_v49 = vld [vmem:[#allocation14 + $0x30] sm:$0xff]  }
 0x225   : > { %v871_v52 = vpack.c.bf16 %v818_v48, %v815_v47  ;;  %v1466_v4 = vpop.f32.mrb[3].mxu0  ;;  %v869_v27 = vpack.c.bf16 %v696_v26, %v696_v26  ;;  %v1723_v47 = vld [vmem:[#allocation14 + $0x20] sm:$0xff]   ;;  %v1724_v48 = vld [vmem:[#allocation14 + $0x28] sm:$0xff]  }
 0x226   : > { %v870_v53 = vpack.c.bf16 %v810_v51, %v807_v50  ;;  %v1726_v50 = vld [vmem:[#allocation14 + $0x38] sm:$0xff]  }
 0x228   : > { %1500 = vmatpush3.bf16.xpose.msra.mxu0 %v870_v53  ;;  %v1489_v54 = vpop.f32.mrb[4].mxu1 }
 0x229   : > { %v831_v55 = vadd.f32 %v1489_v54, %v1370_v44  ;;  %v822_v56 = vpop.f32.mrb[5].mxu1  ;;  %1501 = vmatprep.subr.bf16.mxu0 %v2134_v0 }
 0x22a   : > { %v823_v57 = vadd.f32 %v1370_v44, %v822_v56  ;;  %v1490_v58 = vpop.f32.mrb[6].mxu1 }
 0x22b   : > { %v834_v59 = vadd.f32 %v1490_v58, %v1370_v44  ;;  %v825_v60 = vpop.f32.mrb[7].mxu1 }
 0x22c   : > { %v826_v62 = vadd.f32 %v1370_v44, %v825_v60 }
 0x22d   : > { %v873_v1 = vpack.c.bf16 %v834_v59, %v831_v55 }
 0x22e   : > { %v872_v3 = vpack.c.bf16 %v826_v62, %v823_v57 }
 0x230   : > { %1502 = vmatpush3.bf16.xpose.msra.mxu0 %v871_v52  ;;  %v1493_v5 = vpop.f32.mrb[8].mxu1 }
 0x231   : > { %1503 = vmatprep.subr.bf16.mxu0 %v2134_v0  ;;  %v847_v6 = vadd.f32 %v1493_v5, %v1370_v44  ;;  %v838_v7 = vpop.f32.mrb[9].mxu1 }
 0x232   : > { %v839_v8 = vadd.f32 %v1370_v44, %v838_v7  ;;  %v1494_v9 = vpop.f32.mrb[10].mxu1 }
 0x233   : > { %v850_v10 = vadd.f32 %v1494_v9, %v1370_v44  ;;  %v841_v11 = vpop.f32.mrb[11].mxu1 }
 0x234   : > { %v842_v12 = vadd.f32 %v1370_v44, %v841_v11 }
 0x235   : > { %v875_v13 = vpack.c.bf16 %v850_v10, %v847_v6 }
 0x236   : > { %v874_v14 = vpack.c.bf16 %v842_v12, %v839_v8 }
 0x238   : > { %1504 = vmatpush3.bf16.xpose.msra.mxu0 %v872_v3  ;;  %v1497_v15 = vpop.f32.mrb[12].mxu1 }
 0x239   : > { %1505 = vmatprep.subr.bf16.mxu0 %v2134_v0  ;;  %v863_v16 = vadd.f32 %v1497_v15, %v1370_v44  ;;  %v854_v17 = vpop.f32.mrb[13].mxu1 }
 0x23a   : > { %v855_v18 = vadd.f32 %v1370_v44, %v854_v17  ;;  %v1498_v19 = vpop.f32.mrb[14].mxu1 }
 0x23b   : > { %v866_v20 = vadd.f32 %v1498_v19, %v1370_v44  ;;  %v857_v21 = vpop.f32.mrb[15].mxu1 }
 0x23c   : > { %v858_v22 = vadd.f32 %v1370_v44, %v857_v21  ;;  %v1720_v44 = vld [vmem:[#allocation14 + $0x8] sm:$0xff]  }
 0x23d   : > { %v877_v23 = vpack.c.bf16 %v866_v20, %v863_v16 }
 0x23e   : > { %v876_v24 = vpack.c.bf16 %v858_v22, %v855_v18 }
 0x240   : > { %1506 = vmatpush3.bf16.xpose.msra.mxu0 %v873_v1 }
 0x241   : > { %1507 = vmatprep.subr.bf16.mxu0 %v2134_v0 }
 0x248   : > { %1508 = vmatpush3.bf16.xpose.msra.mxu0 %v874_v14 }
 0x249   : > { %1509 = vmatprep.subr.bf16.mxu0 %v2134_v0 }
 0x250   : > { %1510 = vmatpush3.bf16.xpose.msra.mxu0 %v875_v13 }
 0x251   : > { %1511 = vmatprep.subr.bf16.mxu0 %v2134_v0 }
 0x258   : > { %1512 = vmatpush3.bf16.xpose.msra.mxu0 %v876_v24 }
 0x259   : > { %1513 = vmatprep.subr.bf16.mxu0 %v2134_v0 }
 0x260   : > { %1514 = vmatpush3.bf16.xpose.msra.mxu0 %v877_v23 }
 0x267   : > { %1516 = vmatmul.mubr.bf16.vlgmr.msra.gmra.mrb[4].mxu0 %v869_v27 }
 0x33a   : > { %v914_v30 = vpop.f32.mrb[4].mxu0 }
 0x33b   : > { %v915_v31 = vadd.f32 %v914_v30, %v879_v29  ;;  %v1517_v32 = vpop.f32.mrb[5].mxu0 }
 0x33c   : > { %v917_v33 = vpop.f32.mrb[6].mxu0 }
 0x33d   : > { %920 = vmax.xlane.f32.xlu0 %v915_v31  ;;  %v1518_v34 = vpop.f32.mrb[7].mxu0 }
 0x3ca   : > { %v921_v35 = vpop.xlane.xlu0 %920 }
 0x3cb   : > { %v922_v36 = vsub.f32 %v915_v31, %v921_v35 }
 0x3cd   : > { %v923_v37 = vmul.f32 1.442695, %v922_v36 }
 0x3cf   : > { %1727 = vpow2.f32 %v923_v37 }
 0x3d9   : > { %v1728_v38 = vpop.eup %1727 }
 0x3da   : > { %925 = vadd.xlane.f32.xlu0 %v1728_v38 }
 0x467   : > { %v926_v39 = vpop.xlane.xlu0 %925 }
 0x468   : > { %1729 = vrcp.f32 %v926_v39 }
 0x472   : > { %v1730_v40 = vpop.eup %1729 }
 0x473   : > { %v928_v41 = vmul.f32 %v1730_v40, %v1728_v38 }
 0x475   : > { %v930_v43 = vpack.c.bf16 %v928_v41, %v928_v41  ;;  %929 = vst [vmem:[%s562_s19] sm:$0xff] %v928_v41 }
 0x477   : > { %1536 = vmatmul.mubr.bf16.vlgmr.msra.gmra.mrb[16].mxu1 %v930_v43 }
 0x478   : > { %1540 = vmatpush3.bf16.msra.mxu1 %v1719_v42  ;;  %1555 = vmatprep.mubr.msk.bf16.mxu1 %vm2135_vm0, %v2134_v0 }
 0x479   : > { %1541 = vmatprep.subr.bf16.mxu1 %v2134_v0 }
 0x47c   : > { %1542 = vmatpush3.bf16.msra.mxu1 %v1720_v44 }
 0x47d   : > { %1543 = vmatprep.subr.bf16.mxu1 %v2134_v0 }
 0x480   : > { %1544 = vmatpush3.bf16.msra.mxu1 %v1721_v45 }
 0x481   : > { %1545 = vmatprep.subr.bf16.mxu1 %v2134_v0 }
 0x484   : > { %1546 = vmatpush3.bf16.msra.mxu1 %v1722_v46 }
 0x485   : > { %1547 = vmatprep.subr.bf16.mxu1 %v2134_v0 }
 0x488   : > { %1548 = vmatpush3.bf16.msra.mxu1 %v1723_v47 }
 0x489   : > { %1549 = vmatprep.subr.bf16.mxu1 %v2134_v0 }
 0x48c   : > { %1550 = vmatpush3.bf16.msra.mxu1 %v1724_v48 }
 0x48d   : > { %1551 = vmatprep.subr.bf16.mxu1 %v2134_v0 }
 0x490   : > { %1552 = vmatpush3.bf16.msra.mxu1 %v1725_v49 }
 0x491   : > { %1553 = vmatprep.subr.bf16.mxu1 %v2134_v0 }
 0x494   : > { %1554 = vmatpush3.bf16.msra.mxu1 %v1726_v50 }
 0x54a   : > { %v965_v51 = vpop.f32.mrb[16].mxu1 }
 0x54b   : > { %v971_v52 = vpack.c.bf16 %v965_v51, %v965_v51  ;;  %v1537_v53 = vpop.f32.mrb[17].mxu1 }
 0x54c   : > { %v968_v54 = vpop.f32.mrb[18].mxu1 }
 0x54d   : > { %v1538_v55 = vpop.f32.mrb[19].mxu1  ;;  %1556 = vmatmul.mubr.bf16.vlgmr.msra.gmra.mrb[20].mxu1 %v971_v52 }
 0x54e   : > { %2002 = shalt.err (!%p1999_p8)
}
 0x54f   : > { %s2003_s5 = scalar_lea.hbm %s2631_s30, 128  ;;  %s2007_s21 = scalar_lea.hbm %s2776_s9, 256 }
 0x550   : > { %p2004_p6 = scmp.ne.s32.totalorder %s2631_s30, %s2003_s5  ;;  %p2008_p7 = scmp.lt.u32.totalorder %s2631_s30, %s2776_s9 }
 0x551   : > { %p2009_p2 = scmp.lt.u32.totalorder %s2007_s21, %s2003_s5  ;;  %p2011_p5 = scmp.lt.u32.totalorder %s2003_s5, %s2631_s30 }
 0x552   : > { %p2005_p13 = pnand %p2004_p6, %p2777_p1 }
 0x553   : > { %p2010_p12 = por %p2009_p2, %p2008_p7 }
 0x554   : > { %p2006_p4 = pneg %p2005_p13 }
 0x555   : > { %p2012_p11 = por %p2011_p5, %p2010_p12 }
 0x557   : > { %p2013_p0 = pnand %p2012_p11, %p2006_p4 }
 0x559   : > { %2016 = shalt.err (!%p2013_p0)
}
 0x55a   : > { %1590 = dma.vmem_to_hbm [thread:$0]  (%p2777_p1), %s1119_s22, 128, %s2631_s30, %s1090_s25   ;;  %v1379_v0 = vld [vmem:[#allocation16] ss:$0 sm:$0xff] }
 0x55b   : > { %s555_s23 = scalar_lea.vmem [#allocation17], %s2541_s26  ;;  %s2778_s28 = sld [smem:[#allocation36_spill]] }
 0x55c   : > { %s1104_s10 = sshll.u32 %s555_s23, 4  ;;  %s1085_s30 = scalar_lea.sflag [#allocation4], %s2529_s16  ;;  %s2661_s10 = int_to_ptr.vmem [resolvable:$true] %s1104_s10 }
 0x55d   : > { %s2017_s26 = scalar_lea.vmem %s2661_s10, 128  ;;  %s2137_s11 = smov [#allocation17]  }
 0x55e   : > { %p2018_p3 = scmp.ne.s32.totalorder %s2661_s10, %s2017_s26  ;;  %s2021_s22 = sshll.u32 %s2137_s11, 4  ;;  %s2022_s22 = int_to_ptr.vmem [resolvable:$false] %s2021_s22 }
 0x55f   : > { %s2023_s25 = scalar_lea.vmem %s2022_s22, 256  ;;  %p2024_p8 = scmp.lt.s32.totalorder %s2661_s10, %s2022_s22 }
 0x560   : > { %p2019_p10 = pnand %p2018_p3, %p2777_p1  ;;  %p2025_p6 = scmp.lt.s32.totalorder %s2023_s25, %s2017_s26 }
 0x561   : > { %s2659_s3 = scalar_lea.hbm %s2778_s28, %s1390_s7 }
 0x562   : > { %p2020_p9 = pneg %p2019_p10  ;;  %p2026_p13 = por %p2025_p6, %p2024_p8 }
 0x564   : > { %p2027_p4 = pnand %p2026_p13, %p2020_p9 }
 0x620   : > { %v1077_v56 = vpop.f32.mrb[20].mxu1 }
 0x621   : > { %v1078_v57 = vadd.f32 %v1379_v0, %v1077_v56  ;;  %v1557_v58 = vpop.f32.mrb[21].mxu1 }
 0x622   : > { %v1080_v59 = vpop.f32.mrb[22].mxu1 }
 0x623   : > { %1083 = vst [vmem:[%s555_s23] sm:$0xff] %v1078_v57  ;;  %v1558_v60 = vpop.f32.mrb[23].mxu1 }
 0x624   : > { %2030 = shalt.err (!%p2027_p4)
}
 0x625   : > { %s2031_s16 = scalar_lea.hbm %s2659_s3, 128  ;;  %s2035_s15 = scalar_lea.hbm %s2778_s28, 256 }
 0x626   : > { %p2032_p7 = scmp.ne.s32.totalorder %s2659_s3, %s2031_s16  ;;  %p2036_p5 = scmp.lt.u32.totalorder %s2659_s3, %s2778_s28 }
 0x627   : > { %p2037_p11 = scmp.lt.u32.totalorder %s2035_s15, %s2031_s16  ;;  %p2039_p3 = scmp.lt.u32.totalorder %s2031_s16, %s2659_s3 }
 0x628   : > { %p2033_p2 = pnand %p2032_p7, %p2777_p1 }
 0x629   : > { %p2038_p0 = por %p2037_p11, %p2036_p5 }
 0x62a   : > { %p2034_p12 = pneg %p2033_p2 }
 0x62b   : > { %p2040_p10 = por %p2039_p3, %p2038_p0 }
 0x62d   : > { %p2041_p9 = pnand %p2040_p10, %p2034_p12 }
 0x62f   : > { %2044 = shalt.err (!%p2041_p9)
}
 0x630   : > { %1589 = dma.vmem_to_hbm [thread:$0]  (%p2777_p1), %s2661_s10, 128, %s2659_s3, %s1085_s30  }
 0x631 PF: > { %s1130_s24 = sand.u32 1, %s2099_s13   ;;  %p2779_p8 = scmp.ne.s32.totalorder %s2757_s12, 0 }
 0x632   : > { %p2780_p6 = scmp.ge.s32.totalorder %s2119_s18, 2  ;;  %s1131_s19 = scalar_lea.sflag [#allocation4], %s1130_s24 }
 0x634   : > { %p1623_p13 = pnand %p2780_p6, %p2779_p8 }
 0x636   : > { %2090 = dma.done.wait (!%p1623_p13), %s1131_s19, 128  }
 0x637   : > { %2092 = vsyncadd (!%p1623_p13), %s1131_s19, 4294967168  ;;  %s1140_s23 = scalar_lea.sflag [#allocation19], %s1130_s24 }
 0x638   : > { %2094 = dma.done.wait (!%p1623_p13), %s1140_s23, 128  }
 0x639   : > { %2096 = vsyncadd (!%p1623_p13), %s1140_s23, 4294967168  ;;  %s36_s18 = sadd.s32 1, %s2119_s18   ;;  %s2781_s29 = sld [smem:[#allocation27_spill]] }
 0x63a   : > { %p33_p4 = scmp.ge.s32.totalorder %s36_s18, 4   ;;  %s2782_s15 = sld [smem:[#allocation31_spill]] }
 0x63b   : > { %s2783_s10 = sld [smem:[#allocation30_spill]]  ;;  %s2784_s13 = smov %s2103_s14 }
 0x63c   : > { %s2786_s16 = smov %s2115_s17  ;;  %35 = sbr.rel (!%p33_p4) target bundleno = 20 (0x14), region = 166 }
 0x63f   : > { %s2785_s14 = smov %s2781_s29 }
 0x641   : > { %s2787_s17 = smov %s2783_s10 }
 0x643   :  { %1145 = vsyncpa [#allocation3], 1 }
 0x644   :  { %1147 = vsyncpa [#allocation3 + $0x1], 1 }
 0x645   :  { %1148 = vsyncpa [#allocation6], 1 }
 0x646   :  { %1150 = vsyncpa [#allocation6 + $0x1], 1 }
 0x647   :  { %1151 = vsyncpa [#allocation9], 1 }
 0x648   :  { %1152 = vsyncpa [#allocation12], 1 }
 0x649   :  { %1153 = vsyncpa [#allocation15], 1 }
 0x64a   :  { %1154 = vsyncpa [#allocation4], 1 }
 0x64b   :  { %1156 = vsyncpa [#allocation4 + $0x1], 1 }
 0x64c   :  { %1157 = vsyncpa [#allocation19], 1 }
 0x64d   :  { %1159 = vsyncpa [#allocation19 + $0x1], 1 }

</bundles_post_ra>
